<compile_context>
chip_gen: v7x
topology: tpu7x:2x2x1
jax: 0.10.0
libtpu: 0.0.40
codegen_flags: <defaults>
</compile_context>

<pallas_src>
import functools

import jax
import jax.numpy as jnp
from jax import lax
from jax.experimental import pallas as pl
from jax.experimental.pallas import tpu as pltpu


# --------------------------------------------------------------------------
# small helpers
# --------------------------------------------------------------------------
def _round_up(x, m):
    return (x + m - 1) // m * m


def _pick_row_tile(m, max_tile):
    """Row tile: multiple of 8 (sublane), capped, and padded M that it divides."""
    tm = min(max_tile, _round_up(m, 8))
    return tm, _round_up(m, tm)


# --------------------------------------------------------------------------
# Kernel 1: fused image stem + depth-net + softmax + lane-dense LSS lift
# --------------------------------------------------------------------------
def _stem_depth_lift_kernel(x_ref, wb_ref, bb_ref, wdc_ref, bdc_ref, rep_ref,
                            dprob_ref, frus_ref, *, d_pad):
    # stem conv (im2col matmul): bf16 operands -> f32 accumulator, ReLU in f32
    feat = jnp.dot(x_ref[...], wb_ref[...], preferred_element_type=jnp.float32)
    feat = jnp.maximum(feat + bb_ref[...], 0.0)

    # single MXU push: [depth logits padded to 128 | ctx pre-tiled across depth bins]
    dc = jnp.dot(feat.astype(jnp.bfloat16), wdc_ref[...],
                 preferred_element_type=jnp.float32) + bdc_ref[...]
    d_logits = dc[:, :d_pad]        # (TM, 128), pad lanes biased to -1e9
    ctx_tiled = dc[:, d_pad:]       # (TM, D*C), ctx[:, c] replicated at lane d*C + c

    # softmax over the padded 128-lane depth axis (pad lanes -> exp == 0)
    m = jnp.max(d_logits, axis=-1, keepdims=True)
    e = jnp.exp(d_logits - m)
    probs = e * pl.reciprocal(jnp.sum(e, axis=-1, keepdims=True), approx=True)
    dprob_ref[...] = probs          # (TM, 128) full-lane store

    # LSS lift: replicate probs across ctx lanes via a small constant MXU matmul,
    # then a lane-wise multiply -> (TM, D*C) lane-dense frustum store (no reshape).
    probs_exp = jnp.dot(probs.astype(jnp.bfloat16), rep_ref[...],
                        preferred_element_type=jnp.float32)
    frus_ref[...] = (probs_exp * ctx_tiled).astype(frus_ref.dtype)


def stem_depth_lift(x, w_bk, b_bk, w_dc, b_dc, rep_d, *, depth_bins, d_pad=128,
                    max_tile_m=256):
    """x:(M, c_patch) bf16 -> (depth_prob (M, D) f32, frustum (M, D*C) bf16)."""
    M, K = x.shape
    c_feat = w_bk.shape[1]
    n_dc = w_dc.shape[1]
    dxc = n_dc - d_pad
    TM, Mp = _pick_row_tile(M, max_tile_m)
    if Mp != M:
        x = jnp.pad(x, ((0, Mp - M), (0, 0)))

    dprob, frus = pl.pallas_call(
        functools.partial(_stem_depth_lift_kernel, d_pad=d_pad),
        out_shape=(jax.ShapeDtypeStruct((Mp, d_pad), jnp.float32),
                   jax.ShapeDtypeStruct((Mp, dxc), jnp.bfloat16)),
        grid=(Mp // TM,),
        in_specs=[
            pl.BlockSpec((TM, K), lambda i: (i, 0)),
            pl.BlockSpec((K, c_feat), lambda i: (0, 0)),
            pl.BlockSpec((1, c_feat), lambda i: (0, 0)),
            pl.BlockSpec((c_feat, n_dc), lambda i: (0, 0)),
            pl.BlockSpec((1, n_dc), lambda i: (0, 0)),
            pl.BlockSpec((d_pad, dxc), lambda i: (0, 0)),
        ],
        out_specs=(pl.BlockSpec((TM, d_pad), lambda i: (i, 0)),
                   pl.BlockSpec((TM, dxc), lambda i: (i, 0))),
        compiler_params=pltpu.CompilerParams(
            dimension_semantics=("parallel",)),
    )(x, w_bk, b_bk.reshape(1, -1), w_dc, b_dc.reshape(1, -1), rep_d)
    return dprob[:M, :depth_bins], frus[:M]


# --------------------------------------------------------------------------
# Kernel 2: voxel pooling as a blocked one-hot MXU scatter
# --------------------------------------------------------------------------
def _voxel_pool_kernel(cell_ref, frus_ref, bev_ref, acc_ref, *, cell_tile):
    ct = pl.program_id(1)
    pt = pl.program_id(2)

    @pl.when(pt == 0)
    def _():
        acc_ref[...] = jnp.zeros_like(acc_ref)

    tp = frus_ref.shape[0]
    # one-hot^T mask for this cell tile: (cell_tile, TP); invalid / padded points have
    # cell index -1 which matches no iota row, so they contribute nothing.
    iota = lax.broadcasted_iota(jnp.int32, (cell_tile, tp), 0) + ct * cell_tile
    onehot = (iota == cell_ref[0]).astype(jnp.bfloat16)
    acc_ref[...] += jnp.dot(onehot, frus_ref[...],
                            preferred_element_type=jnp.float32)

    @pl.when(pt == pl.num_programs(2) - 1)
    def _():
        bev_ref[...] = acc_ref[...].astype(bev_ref.dtype)


def voxel_pool(cell_idx, frustum, *, num_cells, tp_max=512, cell_tile_max=128):
    """cell_idx:(B,P) int32 (-1 = invalid), frustum:(B,P,C) bf16 -> (B*cells, C) bf16."""
    B, P = cell_idx.shape
    C = frustum.shape[-1]
    TP = min(tp_max, _round_up(P, 128))
    Pp = _round_up(P, TP)
    CT = cell_tile_max if num_cells % cell_tile_max == 0 else num_cells
    n_pt = Pp // TP
    n_ct = num_cells // CT

    cell = cell_idx.reshape(B, 1, P)
    if Pp != P:
        cell = jnp.pad(cell, ((0, 0), (0, 0), (0, Pp - P)), constant_values=-1)
        frustum = jnp.pad(frustum, ((0, 0), (0, Pp - P), (0, 0)))
    frus = frustum.reshape(B * Pp, C)

    return pl.pallas_call(
        functools.partial(_voxel_pool_kernel, cell_tile=CT),
        out_shape=jax.ShapeDtypeStruct((B * num_cells, C), jnp.bfloat16),
        grid=(B, n_ct, n_pt),
        in_specs=[
            pl.BlockSpec((1, 1, TP), lambda b, ct, pt: (b, 0, pt)),
            pl.BlockSpec((TP, C), lambda b, ct, pt: (b * n_pt + pt, 0)),
        ],
        out_specs=pl.BlockSpec((CT, C), lambda b, ct, pt: (b * n_ct + ct, 0)),
        scratch_shapes=[pltpu.VMEM((CT, C), jnp.float32)],
        compiler_params=pltpu.CompilerParams(
            dimension_semantics=("parallel", "parallel", "arbitrary")),
    )(cell, frus)


# --------------------------------------------------------------------------
# Kernel 3: fused BEV trunk + detection head (head output padded to 128 lanes)
# --------------------------------------------------------------------------
def _trunk_head_kernel(x_ref, wt_ref, bt_ref, wh_ref, bh_ref, o_ref):
    trunk = jnp.dot(x_ref[...], wt_ref[...], preferred_element_type=jnp.float32)
    trunk = jnp.maximum(trunk + bt_ref[...], 0.0)
    out = jnp.dot(trunk.astype(jnp.bfloat16), wh_ref[...],
                  preferred_element_type=jnp.float32) + bh_ref[...]
    o_ref[...] = out.astype(o_ref.dtype)


def trunk_head(x, w_t, b_t, w_h, b_h, *, n_out, max_tile_m=256):
    """x:(M, c_ctx) bf16 -> head outputs (M, n_out) f32, trunk never leaves VMEM."""
    M, K = x.shape
    n_t = w_t.shape[1]
    n_hp = w_h.shape[1]          # padded to 128 lanes
    TM, Mp = _pick_row_tile(M, max_tile_m)
    if Mp != M:
        x = jnp.pad(x, ((0, Mp - M), (0, 0)))
    out = pl.pallas_call(
        _trunk_head_kernel,
        out_shape=jax.ShapeDtypeStruct((Mp, n_hp), jnp.float32),
        grid=(Mp // TM,),
        in_specs=[
            pl.BlockSpec((TM, K), lambda i: (i, 0)),
            pl.BlockSpec((K, n_t), lambda i: (0, 0)),
            pl.BlockSpec((1, n_t), lambda i: (0, 0)),
            pl.BlockSpec((n_t, n_hp), lambda i: (0, 0)),
            pl.BlockSpec((1, n_hp), lambda i: (0, 0)),
        ],
        out_specs=pl.BlockSpec((TM, n_hp), lambda i: (i, 0)),
        compiler_params=pltpu.CompilerParams(
            dimension_semantics=("parallel",)),
    )(x, w_t, b_t.reshape(1, -1), w_h, b_h.reshape(1, -1))
    return out[:M, :n_out]


# --------------------------------------------------------------------------
# Model
# --------------------------------------------------------------------------
class BaseBEVDepth:
    def __init__(self, key, num_cams=2, img_size=16, downsample=4,
                 c_in=3, c_feat=64, depth_bins=16, c_ctx=32,
                 bev_size=16, bev_range=10.0, c_bev=64, num_classes=2,
                 d_min=1.0, d_step=0.5):
        self.num_cams = num_cams
        self.downsample = downsample
        self.c_in = c_in
        self.c_feat = c_feat
        self.D = depth_bins
        self.c_ctx = c_ctx
        self.bev_size = bev_size
        self.bev_range = bev_range
        self.c_bev = c_bev
        self.num_classes = num_classes
        self.d_min = d_min
        self.d_step = d_step
        self.idx = 0                # host-side counter, kept OUTSIDE the jitted trace

        D_PAD = 128                 # depth-logit lanes (pad -> unmasked stores)
        HEAD_PAD = 128              # head-output lanes (pad -> unmasked stores)
        self.d_pad = D_PAD
        self.head_pad = HEAD_PAD
        c_patch = c_in * downsample * downsample
        head_out = num_classes + 8  # heatmap + reg(2) + height(1) + dim(3) + rot(2)
        self.head_out = head_out
        ks = jax.random.split(key, 5)

        def w(k, shape):
            return (jax.random.normal(k, shape, jnp.float32)
                    / jnp.sqrt(jnp.float32(shape[0])))

        dep_w = w(ks[1], (c_feat, depth_bins))
        ctx_w = w(ks[2], (c_feat, c_ctx))

        # depth weights padded to 128 lanes; pad-lane bias -1e9 so softmax pad prob == 0
        dep_w_p = jnp.zeros((c_feat, D_PAD), jnp.float32).at[:, :depth_bins].set(dep_w)
        dep_b_p = jnp.full((D_PAD,), -1e9, jnp.float32).at[:depth_bins].set(0.0)
        # ctx weights pre-tiled across depth bins: column d*C + c holds ctx_w[:, c]
        ctx_w_t = jnp.tile(ctx_w, (1, depth_bins))
        ctx_b_t = jnp.zeros((depth_bins * c_ctx,), jnp.float32)
        # lane-replication matrix for the lift: rep[d, d*C + c] = 1 (rows >= D are zero)
        rep = jnp.kron(jnp.eye(depth_bins, dtype=jnp.float32),
                       jnp.ones((1, c_ctx), jnp.float32))
        rep = jnp.zeros((D_PAD, depth_bins * c_ctx), jnp.float32).at[:depth_bins].set(rep)

        head_w = w(ks[4], (c_bev, head_out))
        head_w_p = jnp.zeros((c_bev, HEAD_PAD), jnp.float32).at[:, :head_out].set(head_w)

        # weights in bf16 (MXU-native operand dtype); biases f32 (added to f32 accumulators)
        self.params = {
            "bk_w": w(ks[0], (c_patch, c_feat)).astype(jnp.bfloat16),
            "bk_b": jnp.zeros((c_feat,), jnp.float32),
            "dc_w": jnp.concatenate([dep_w_p, ctx_w_t], axis=1).astype(jnp.bfloat16),
            "dc_b": jnp.concatenate([dep_b_p, ctx_b_t]),
            "rep_d": rep.astype(jnp.bfloat16),
            "trunk_w": w(ks[3], (c_ctx, c_bev)).astype(jnp.bfloat16),
            "trunk_b": jnp.zeros((c_bev,), jnp.float32),
            "head_w": head_w_p.astype(jnp.bfloat16),
            "head_b": jnp.zeros((HEAD_PAD,), jnp.float32),
        }

        self._forward_jit = jax.jit(self._forward_impl, static_argnames=("is_train",))

    # ----- geometry glue: frustum -> ego -> per-point BEV cell index (batched, jit-able)
    def _build_cell_indices(self, mats_dict, B, N, Hf, Wf):
        s2e = mats_dict["sensor2ego_mats"][:, 0]   # (B, N, 4, 4) key sweep
        intrin = mats_dict["intrin_mats"][:, 0]
        ida = mats_dict["ida_mats"][:, 0]
        bda = mats_dict["bda_mat"]                 # (B, 4, 4)

        ds = self.downsample
        u = (jnp.arange(Wf, dtype=jnp.float32) + 0.5) * ds
        v = (jnp.arange(Hf, dtype=jnp.float32) + 0.5) * ds
        d = self.d_min + jnp.arange(self.D, dtype=jnp.float32) * self.d_step
        vv, uu, dd = jnp.meshgrid(v, u, d, indexing="ij")       # (Hf, Wf, D)
        pts = jnp.stack([uu, vv, dd, jnp.ones_like(uu)], -1).reshape(-1, 4)

        ida_inv = jnp.linalg.inv(ida)                            # (B, N, 4, 4)
        p1 = jnp.einsum("pk,bnlk->bnpl", pts, ida_inv)           # undo ida aug
        p2 = jnp.concatenate([p1[..., :2] * p1[..., 2:3], p1[..., 2:4]], -1)
        combine = s2e @ jnp.linalg.inv(intrin)                   # camera -> ego
        p3 = jnp.einsum("bnpk,bnlk->bnpl", p2, combine)
        p4 = jnp.einsum("bnpk,blk->bnpl", p3, bda)               # bda aug
        xyz = p4[..., :3].reshape(B, N * Hf * Wf * self.D, 3)

        res = 2.0 * self.bev_range / self.bev_size
        ix = jnp.floor((xyz[..., 0] + self.bev_range) / res).astype(jnp.int32)
        iy = jnp.floor((xyz[..., 1] + self.bev_range) / res).astype(jnp.int32)
        valid = ((ix >= 0) & (ix < self.bev_size) &
                 (iy >= 0) & (iy < self.bev_size))
        return jnp.where(valid, iy * self.bev_size + ix, -1).astype(jnp.int32)  # (B, P)

    # ----- jitted forward pipeline -----
    def _forward_impl(self, sweep_imgs, mats_dict, is_train=False):
        p = self.params
        B, S, N, C, H, W = sweep_imgs.shape
        ds = self.downsample
        Hf, Wf = H // ds, W // ds
        cells = self.bev_size * self.bev_size

        # TODO(synk): only the key sweep is processed (multi-sweep temporal fusion via
        # sensor2sensor_mats is not modelled).
        imgs = sweep_imgs[:, 0]                                   # (B, N, C, H, W)

        # im2col for the 4x4 / stride-4 stem conv (exact strided-conv semantics)
        x = imgs.reshape(B * N, C, Hf, ds, Wf, ds)
        x = x.transpose(0, 2, 4, 1, 3, 5).reshape(B * N * Hf * Wf, C * ds * ds)
        x = x.astype(jnp.bfloat16)

        # 1+2) fused stem + depth-net + softmax + lane-dense LSS lift
        dprob, frustum = stem_depth_lift(x, p["bk_w"], p["bk_b"], p["dc_w"], p["dc_b"],
                                         p["rep_d"], depth_bins=self.D, d_pad=self.d_pad)
        depth = dprob.reshape(B * N, Hf, Wf, self.D).transpose(0, 3, 1, 2)

        # 3) voxel pooling: blocked one-hot MXU scatter into the BEV grid
        #    frustum rows are ordered (b, n, hf, wf, d) — identical to the cell ordering.
        cell_idx = self._build_cell_indices(mats_dict, B, N, Hf, Wf)        # (B, P) int32
        frustum_b = frustum.reshape(B, N * Hf * Wf * self.D, self.c_ctx)    # (B, P, C)
        bev = voxel_pool(cell_idx, frustum_b, num_cells=cells)              # (B*cells, C) bf16

        # 4) fused BEV trunk + detection head (head output padded to 128 lanes internally)
        out = trunk_head(bev, p["trunk_w"], p["trunk_b"], p["head_w"], p["head_b"],
                         n_out=self.head_out)
        out = out.reshape(B, self.bev_size, self.bev_size, -1)
        out = out.transpose(0, 3, 1, 2)                           # NCHW BEV maps

        nc = self.num_classes
        preds = [{
            "heatmap": out[:, :nc],
            "reg":     out[:, nc:nc + 2],
            "height":  out[:, nc + 2:nc + 3],
            "dim":     out[:, nc + 3:nc + 6],
            "rot":     out[:, nc + 6:nc + 8],
        }]
        if is_train:
            return preds, depth
        return preds

    def forward(self, sweep_imgs, mats_dict, is_train=False):
        out = self._forward_jit(sweep_imgs, mats_dict, is_train=is_train)
        self.idx += 1            # PyTorch-parity side effect, outside the traced function
        return out


# --------------------------------------------------------------------------
# Main
# --------------------------------------------------------------------------
if __name__ == "__main__":
    key = jax.random.PRNGKey(0)
    k_img, k_model = jax.random.split(key)

    B, S, N, C, H, W = 1, 1, 2, 3, 16, 16
    sweep_imgs = jax.random.normal(k_img, (B, S, N, C, H, W), jnp.float32)

    def make_intrin():
        K = jnp.eye(4, dtype=jnp.float32)
        K = K.at[0, 0].set(8.0).at[1, 1].set(8.0)
        K = K.at[0, 2].set(8.0).at[1, 2].set(8.0)
        return K

    def cam2ego(yaw, t):
        # camera frame (x right, y down, z forward) -> ego (x fwd, y left, z up)
        base = jnp.array([[0., 0., 1.], [-1., 0., 0.], [0., -1., 0.]],
                         dtype=jnp.float32)
        c, s = jnp.cos(yaw), jnp.sin(yaw)
        rz = jnp.array([[c, -s, 0.], [s, c, 0.], [0., 0., 1.]], dtype=jnp.float32)
        R = rz @ base
        M = jnp.eye(4, dtype=jnp.float32)
        M = M.at[:3, :3].set(R).at[:3, 3].set(jnp.array(t, dtype=jnp.float32))
        return M

    s2e = jnp.stack([cam2ego(jnp.float32(0.0), [1.0, 0.0, 1.5]),
                     cam2ego(jnp.float32(jnp.pi), [-1.0, 0.0, 1.5])])

    eye4 = jnp.eye(4, dtype=jnp.float32)
    mats_dict = {
        "sensor2ego_mats":    jnp.broadcast_to(s2e, (B, S, N, 4, 4)),
        "intrin_mats":        jnp.broadcast_to(make_intrin(), (B, S, N, 4, 4)),
        "ida_mats":           jnp.broadcast_to(eye4, (B, S, N, 4, 4)),
        "sensor2sensor_mats": jnp.broadcast_to(eye4, (B, S, N, 4, 4)),
        "bda_mat":            jnp.broadcast_to(eye4, (B, 4, 4)),
    }

    model = BaseBEVDepth(k_model, num_cams=N, img_size=H)

    # training path: (preds, depth)
    preds, depth = model.forward(sweep_imgs, mats_dict, is_train=True)
    jax.block_until_ready(preds[0]["heatmap"])
    jax.block_until_ready(depth)

    # inference path: preds only
    preds_infer = model.forward(sweep_imgs, mats_dict, is_train=False)
    jax.block_until_ready(preds_infer[0]["heatmap"])

    assert preds[0]["heatmap"].shape == (B, 2, 16, 16)
    assert preds[0]["dim"].shape == (B, 3, 16, 16)
    assert depth.shape == (B * N, 16, 4, 4)  # (B*num_cams, D, Hf, Wf)

    print("KERNEL_OK")
</pallas_src>

<mosaic_0001>
module attributes {stable_mosaic.version = 11 : i64} {
  func.func @_stem_depth_lift_kernel(%arg0: i32, %arg1: memref<32x48xbf16, #tpu.memory_space<vmem>>, %arg2: memref<48x64xbf16, #tpu.memory_space<vmem>>, %arg3: memref<1x64xf32, #tpu.memory_space<vmem>>, %arg4: memref<64x640xbf16, #tpu.memory_space<vmem>>, %arg5: memref<1x640xf32, #tpu.memory_space<vmem>>, %arg6: memref<128x512xbf16, #tpu.memory_space<vmem>>, %arg7: memref<32x128xf32, #tpu.memory_space<vmem>>, %arg8: memref<32x512xbf16, #tpu.memory_space<vmem>>) attributes {dimension_semantics = [#tpu.dimension_semantics<parallel>], iteration_bounds = array<i64: 1>, scalar_prefetch = 0 : i64, scratch_operands = 0 : i64, tpu.core_type = #tpu.core_type<tc>, window_params = [{transform_indices = @transform_0, window_bounds = array<i64: 32, 48>}, {pipeline_mode = #tpu.pipeline_mode<synchronous>, transform_indices = @transform_1, window_bounds = array<i64: 48, 64>}, {pipeline_mode = #tpu.pipeline_mode<synchronous>, transform_indices = @transform_2, window_bounds = array<i64: 1, 64>}, {pipeline_mode = #tpu.pipeline_mode<synchronous>, transform_indices = @transform_3, window_bounds = array<i64: 64, 640>}, {pipeline_mode = #tpu.pipeline_mode<synchronous>, transform_indices = @transform_4, window_bounds = array<i64: 1, 640>}, {pipeline_mode = #tpu.pipeline_mode<synchronous>, transform_indices = @transform_5, window_bounds = array<i64: 128, 512>}, {transform_indices = @transform_6, window_bounds = array<i64: 32, 128>}, {transform_indices = @transform_7, window_bounds = array<i64: 32, 512>}]} {
    %c0 = arith.constant 0 : index
    %c0_0 = arith.constant 0 : index
    %0 = vector.load %arg1[%c0, %c0_0] : memref<32x48xbf16, #tpu.memory_space<vmem>>, vector<32x48xbf16>
    %c0_1 = arith.constant 0 : index
    %c0_2 = arith.constant 0 : index
    %1 = vector.load %arg2[%c0_1, %c0_2] : memref<48x64xbf16, #tpu.memory_space<vmem>>, vector<48x64xbf16>
    %cst = arith.constant dense<0.000000e+00> : vector<32x64xf32>
    %2 = tpu.matmul %0, %1, %cst {dimension_numbers = #tpu.dot_dimension_numbers<[1], [0], [0], [1], [0, 0, 1, 1], [], []>} : vector<32x48xbf16>, vector<48x64xbf16>, vector<32x64xf32> -> vector<32x64xf32>
    %c0_3 = arith.constant 0 : index
    %c0_4 = arith.constant 0 : index
    %3 = vector.load %arg3[%c0_3, %c0_4] : memref<1x64xf32, #tpu.memory_space<vmem>>, vector<1x64xf32>
    %4 = vector.broadcast %3 : vector<1x64xf32> to vector<32x64xf32>
    %5 = arith.addf %2, %4 : vector<32x64xf32>
    %cst_5 = arith.constant 0.000000e+00 : f32
    %6 = vector.broadcast %cst_5 : f32 to vector<32x64xf32>
    %7 = arith.maximumf %5, %6 : vector<32x64xf32>
    %8 = arith.truncf %7 : vector<32x64xf32> to vector<32x64xbf16>
    %c0_6 = arith.constant 0 : index
    %c0_7 = arith.constant 0 : index
    %9 = vector.load %arg4[%c0_6, %c0_7] : memref<64x640xbf16, #tpu.memory_space<vmem>>, vector<64x640xbf16>
    %cst_8 = arith.constant dense<0.000000e+00> : vector<32x640xf32>
    %10 = tpu.matmul %8, %9, %cst_8 {dimension_numbers = #tpu.dot_dimension_numbers<[1], [0], [0], [1], [0, 0, 1, 1], [], []>} : vector<32x64xbf16>, vector<64x640xbf16>, vector<32x640xf32> -> vector<32x640xf32>
    %c0_9 = arith.constant 0 : index
    %c0_10 = arith.constant 0 : index
    %11 = vector.load %arg5[%c0_9, %c0_10] : memref<1x640xf32, #tpu.memory_space<vmem>>, vector<1x640xf32>
    %12 = vector.broadcast %11 : vector<1x640xf32> to vector<32x640xf32>
    %13 = arith.addf %10, %12 : vector<32x640xf32>
    %14 = vector.extract_strided_slice %13 {offsets = [0, 0], sizes = [32, 128], strides = [1, 1]} : vector<32x640xf32> to vector<32x128xf32>
    %15 = vector.extract_strided_slice %13 {offsets = [0, 128], sizes = [32, 512], strides = [1, 1]} : vector<32x640xf32> to vector<32x512xf32>
    %cst_11 = arith.constant dense<0xFF800000> : vector<32xf32>
    %16 = vector.multi_reduction <maximumf>, %14, %cst_11 [1] : vector<32x128xf32> to vector<32xf32>
    %17 = vector.shape_cast %16 : vector<32xf32> to vector<32x1xf32>
    %18 = vector.broadcast %17 : vector<32x1xf32> to vector<32x128xf32>
    %19 = arith.subf %14, %18 : vector<32x128xf32>
    %20 = math.exp %19 : vector<32x128xf32>
    %cst_12 = arith.constant dense<0.000000e+00> : vector<32xf32>
    %21 = vector.multi_reduction <add>, %20, %cst_12 [1] : vector<32x128xf32> to vector<32xf32>
    %22 = vector.shape_cast %21 : vector<32xf32> to vector<32x1xf32>
    %23 = tpu.reciprocal %22 {approx = true} : vector<32x1xf32> -> vector<32x1xf32>
    %24 = vector.broadcast %23 : vector<32x1xf32> to vector<32x128xf32>
    %25 = arith.mulf %20, %24 : vector<32x128xf32>
    %c0_13 = arith.constant 0 : index
    %c0_14 = arith.constant 0 : index
    %26 = vector.load %arg7[%c0_13, %c0_14] : memref<32x128xf32, #tpu.memory_space<vmem>>, vector<32x128xf32>
    tpu.vector_store %arg7[%c0_13, %c0_14], %25 {strides = array<i32>} : memref<32x128xf32, #tpu.memory_space<vmem>>, vector<32x128xf32>,
    %27 = arith.truncf %25 : vector<32x128xf32> to vector<32x128xbf16>
    %c0_15 = arith.constant 0 : index
    %c0_16 = arith.constant 0 : index
    %28 = vector.load %arg6[%c0_15, %c0_16] : memref<128x512xbf16, #tpu.memory_space<vmem>>, vector<128x512xbf16>
    %cst_17 = arith.constant dense<0.000000e+00> : vector<32x512xf32>
    %29 = tpu.matmul %27, %28, %cst_17 {dimension_numbers = #tpu.dot_dimension_numbers<[1], [0], [0], [1], [0, 0, 1, 1], [], []>} : vector<32x128xbf16>, vector<128x512xbf16>, vector<32x512xf32> -> vector<32x512xf32>
    %30 = arith.mulf %29, %15 : vector<32x512xf32>
    %31 = arith.truncf %30 : vector<32x512xf32> to vector<32x512xbf16>
    %c0_18 = arith.constant 0 : index
    %c0_19 = arith.constant 0 : index
    %32 = vector.load %arg8[%c0_18, %c0_19] : memref<32x512xbf16, #tpu.memory_space<vmem>>, vector<32x512xbf16>
    tpu.vector_store %arg8[%c0_18, %c0_19], %31 {strides = array<i32>} : memref<32x512xbf16, #tpu.memory_space<vmem>>, vector<32x512xbf16>,
    return
  }
  func.func @transform_0(%arg0: i32) -> (i32, i32) {
    %c0_i32 = arith.constant 0 : i32
    %c0_i32_0 = arith.constant 0 : i32
    return %arg0, %c0_i32 : i32, i32
  }
  func.func @transform_1(%arg0: i32) -> (i32, i32) {
    %c0_i32 = arith.constant 0 : i32
    %c0_i32_0 = arith.constant 0 : i32
    %c0_i32_1 = arith.constant 0 : i32
    return %c0_i32, %c0_i32_0 : i32, i32
  }
  func.func @transform_2(%arg0: i32) -> (i32, i32) {
    %c0_i32 = arith.constant 0 : i32
    %c0_i32_0 = arith.constant 0 : i32
    %c0_i32_1 = arith.constant 0 : i32
    return %c0_i32, %c0_i32_0 : i32, i32
  }
  func.func @transform_3(%arg0: i32) -> (i32, i32) {
    %c0_i32 = arith.constant 0 : i32
    %c0_i32_0 = arith.constant 0 : i32
    %c0_i32_1 = arith.constant 0 : i32
    return %c0_i32, %c0_i32_0 : i32, i32
  }
  func.func @transform_4(%arg0: i32) -> (i32, i32) {
    %c0_i32 = arith.constant 0 : i32
    %c0_i32_0 = arith.constant 0 : i32
    %c0_i32_1 = arith.constant 0 : i32
    return %c0_i32, %c0_i32_0 : i32, i32
  }
  func.func @transform_5(%arg0: i32) -> (i32, i32) {
    %c0_i32 = arith.constant 0 : i32
    %c0_i32_0 = arith.constant 0 : i32
    %c0_i32_1 = arith.constant 0 : i32
    return %c0_i32, %c0_i32_0 : i32, i32
  }
  func.func @transform_6(%arg0: i32) -> (i32, i32) {
    %c0_i32 = arith.constant 0 : i32
    %c0_i32_0 = arith.constant 0 : i32
    return %arg0, %c0_i32 : i32, i32
  }
  func.func @transform_7(%arg0: i32) -> (i32, i32) {
    %c0_i32 = arith.constant 0 : i32
    %c0_i32_0 = arith.constant 0 : i32
    return %arg0, %c0_i32 : i32, i32
  }
}

module attributes {stable_mosaic.version = 11 : i64} {
  func.func @_voxel_pool_kernel(%arg0: i32, %arg1: i32, %arg2: i32, %arg3: memref<1x1x512xi32, #tpu.memory_space<vmem>>, %arg4: memref<512x32xbf16, #tpu.memory_space<vmem>>, %arg5: memref<128x32xbf16, #tpu.memory_space<vmem>>, %arg6: memref<128x32xf32, #tpu.memory_space<vmem>>) attributes {dimension_semantics = [#tpu.dimension_semantics<parallel>, #tpu.dimension_semantics<parallel>, #tpu.dimension_semantics<arbitrary>], iteration_bounds = array<i64: 1, 2, 1>, scalar_prefetch = 0 : i64, scratch_operands = 1 : i64, tpu.core_type = #tpu.core_type<tc>, window_params = [{transform_indices = @transform_0, window_bounds = array<i64: 1, 1, 512>}, {transform_indices = @transform_1, window_bounds = array<i64: 512, 32>}, {transform_indices = @transform_2, window_bounds = array<i64: 128, 32>}]} {
    %c0_i32 = arith.constant 0 : i32
    %0 = arith.cmpi eq, %arg2, %c0_i32 : i32
    %1 = arith.extui %0 : i1 to i32
    %c0_i32_0 = arith.constant 0 : i32
    %2 = arith.cmpi ne, %1, %c0_i32_0 : i32
    scf.if %2 {
      %cst_11 = arith.constant 0.000000e+00 : f32
      %22 = vector.broadcast %cst_11 : f32 to vector<128x32xf32>
      %c0_12 = arith.constant 0 : index
      %c0_13 = arith.constant 0 : index
      %23 = vector.load %arg6[%c0_12, %c0_13] : memref<128x32xf32, #tpu.memory_space<vmem>>, vector<128x32xf32>
      tpu.vector_store %arg6[%c0_12, %c0_13], %22 {strides = array<i32>} : memref<128x32xf32, #tpu.memory_space<vmem>>, vector<128x32xf32>,
    } else {
    }
    %3 = tpu.iota {dimensions = array<i32: 0>} : vector<128x512xi32>
    %c128_i32 = arith.constant 128 : i32
    %4 = arith.muli %arg1, %c128_i32 : i32
    %5 = vector.broadcast %4 : i32 to vector<128x512xi32>
    %6 = arith.addi %3, %5 : vector<128x512xi32>
    %c0 = arith.constant 0 : index
    %c0_1 = arith.constant 0 : index
    %c0_2 = arith.constant 0 : index
    %7 = vector.load %arg3[%c0, %c0_1, %c0_2] : memref<1x1x512xi32, #tpu.memory_space<vmem>>, vector<1x1x512xi32>
    %8 = vector.shape_cast %7 : vector<1x1x512xi32> to vector<1x512xi32>
    %9 = vector.broadcast %8 : vector<1x512xi32> to vector<128x512xi32>
    %10 = arith.cmpi eq, %6, %9 : vector<128x512xi32>
    %11 = arith.extui %10 : vector<128x512xi1> to vector<128x512xi32>
    %12 = arith.sitofp %11 : vector<128x512xi32> to vector<128x512xf32>
    %13 = arith.truncf %12 : vector<128x512xf32> to vector<128x512xbf16>
    %c0_3 = arith.constant 0 : index
    %c0_4 = arith.constant 0 : index
    %14 = vector.load %arg6[%c0_3, %c0_4] : memref<128x32xf32, #tpu.memory_space<vmem>>, vector<128x32xf32>
    %c0_5 = arith.constant 0 : index
    %c0_6 = arith.constant 0 : index
    %15 = vector.load %arg4[%c0_5, %c0_6] : memref<512x32xbf16, #tpu.memory_space<vmem>>, vector<512x32xbf16>
    %cst = arith.constant dense<0.000000e+00> : vector<128x32xf32>
    %16 = tpu.matmul %13, %15, %cst {dimension_numbers = #tpu.dot_dimension_numbers<[1], [0], [0], [1], [0, 0, 1, 1], [], []>} : vector<128x512xbf16>, vector<512x32xbf16>, vector<128x32xf32> -> vector<128x32xf32>
    %17 = arith.addf %14, %16 : vector<128x32xf32>
    %c0_7 = arith.constant 0 : index
    %c0_8 = arith.constant 0 : index
    %18 = vector.load %arg6[%c0_7, %c0_8] : memref<128x32xf32, #tpu.memory_space<vmem>>, vector<128x32xf32>
    tpu.vector_store %arg6[%c0_7, %c0_8], %17 {strides = array<i32>} : memref<128x32xf32, #tpu.memory_space<vmem>>, vector<128x32xf32>,
    %c0_i32_9 = arith.constant 0 : i32
    %19 = arith.cmpi eq, %arg2, %c0_i32_9 : i32
    %20 = arith.extui %19 : i1 to i32
    %c0_i32_10 = arith.constant 0 : i32
    %21 = arith.cmpi ne, %20, %c0_i32_10 : i32
    scf.if %21 {
      %c0_11 = arith.constant 0 : index
      %c0_12 = arith.constant 0 : index
      %22 = vector.load %arg6[%c0_11, %c0_12] : memref<128x32xf32, #tpu.memory_space<vmem>>, vector<128x32xf32>
      %23 = arith.truncf %22 : vector<128x32xf32> to vector<128x32xbf16>
      %c0_13 = arith.constant 0 : index
      %c0_14 = arith.constant 0 : index
      %24 = vector.load %arg5[%c0_13, %c0_14] : memref<128x32xbf16, #tpu.memory_space<vmem>>, vector<128x32xbf16>
      tpu.vector_store %arg5[%c0_13, %c0_14], %23 {strides = array<i32>} : memref<128x32xbf16, #tpu.memory_space<vmem>>, vector<128x32xbf16>,
    } else {
    }
    return
  }
  func.func @transform_0(%arg0: i32, %arg1: i32, %arg2: i32) -> (i32, i32, i32) {
    %c0_i32 = arith.constant 0 : i32
    %c0_i32_0 = arith.constant 0 : i32
    return %arg0, %c0_i32, %arg2 : i32, i32, i32
  }
  func.func @transform_1(%arg0: i32, %arg1: i32, %arg2: i32) -> (i32, i32) {
    %c1_i32 = arith.constant 1 : i32
    %0 = arith.muli %arg0, %c1_i32 : i32
    %1 = arith.addi %0, %arg2 : i32
    %c0_i32 = arith.constant 0 : i32
    %c0_i32_0 = arith.constant 0 : i32
    return %1, %c0_i32 : i32, i32
  }
  func.func @transform_2(%arg0: i32, %arg1: i32, %arg2: i32) -> (i32, i32) {
    %c2_i32 = arith.constant 2 : i32
    %0 = arith.muli %arg0, %c2_i32 : i32
    %1 = arith.addi %0, %arg1 : i32
    %c0_i32 = arith.constant 0 : i32
    %c0_i32_0 = arith.constant 0 : i32
    return %1, %c0_i32 : i32, i32
  }
}

module attributes {stable_mosaic.version = 11 : i64} {
  func.func @_trunk_head_kernel(%arg0: i32, %arg1: memref<256x32xbf16, #tpu.memory_space<vmem>>, %arg2: memref<32x64xbf16, #tpu.memory_space<vmem>>, %arg3: memref<1x64xf32, #tpu.memory_space<vmem>>, %arg4: memref<64x128xbf16, #tpu.memory_space<vmem>>, %arg5: memref<1x128xf32, #tpu.memory_space<vmem>>, %arg6: memref<256x128xf32, #tpu.memory_space<vmem>>) attributes {dimension_semantics = [#tpu.dimension_semantics<parallel>], iteration_bounds = array<i64: 1>, scalar_prefetch = 0 : i64, scratch_operands = 0 : i64, tpu.core_type = #tpu.core_type<tc>, window_params = [{transform_indices = @transform_0, window_bounds = array<i64: 256, 32>}, {pipeline_mode = #tpu.pipeline_mode<synchronous>, transform_indices = @transform_1, window_bounds = array<i64: 32, 64>}, {pipeline_mode = #tpu.pipeline_mode<synchronous>, transform_indices = @transform_2, window_bounds = array<i64: 1, 64>}, {pipeline_mode = #tpu.pipeline_mode<synchronous>, transform_indices = @transform_3, window_bounds = array<i64: 64, 128>}, {pipeline_mode = #tpu.pipeline_mode<synchronous>, transform_indices = @transform_4, window_bounds = array<i64: 1, 128>}, {transform_indices = @transform_5, window_bounds = array<i64: 256, 128>}]} {
    %c0 = arith.constant 0 : index
    %c0_0 = arith.constant 0 : index
    %0 = vector.load %arg1[%c0, %c0_0] : memref<256x32xbf16, #tpu.memory_space<vmem>>, vector<256x32xbf16>
    %c0_1 = arith.constant 0 : index
    %c0_2 = arith.constant 0 : index
    %1 = vector.load %arg2[%c0_1, %c0_2] : memref<32x64xbf16, #tpu.memory_space<vmem>>, vector<32x64xbf16>
    %cst = arith.constant dense<0.000000e+00> : vector<256x64xf32>
    %2 = tpu.matmul %0, %1, %cst {dimension_numbers = #tpu.dot_dimension_numbers<[1], [0], [0], [1], [0, 0, 1, 1], [], []>} : vector<256x32xbf16>, vector<32x64xbf16>, vector<256x64xf32> -> vector<256x64xf32>
    %c0_3 = arith.constant 0 : index
    %c0_4 = arith.constant 0 : index
    %3 = vector.load %arg3[%c0_3, %c0_4] : memref<1x64xf32, #tpu.memory_space<vmem>>, vector<1x64xf32>
    %4 = vector.broadcast %3 : vector<1x64xf32> to vector<256x64xf32>
    %5 = arith.addf %2, %4 : vector<256x64xf32>
    %cst_5 = arith.constant 0.000000e+00 : f32
    %6 = vector.broadcast %cst_5 : f32 to vector<256x64xf32>
    %7 = arith.maximumf %5, %6 : vector<256x64xf32>
    %8 = arith.truncf %7 : vector<256x64xf32> to vector<256x64xbf16>
    %c0_6 = arith.constant 0 : index
    %c0_7 = arith.constant 0 : index
    %9 = vector.load %arg4[%c0_6, %c0_7] : memref<64x128xbf16, #tpu.memory_space<vmem>>, vector<64x128xbf16>
    %cst_8 = arith.constant dense<0.000000e+00> : vector<256x128xf32>
    %10 = tpu.matmul %8, %9, %cst_8 {dimension_numbers = #tpu.dot_dimension_numbers<[1], [0], [0], [1], [0, 0, 1, 1], [], []>} : vector<256x64xbf16>, vector<64x128xbf16>, vector<256x128xf32> -> vector<256x128xf32>
    %c0_9 = arith.constant 0 : index
    %c0_10 = arith.constant 0 : index
    %11 = vector.load %arg5[%c0_9, %c0_10] : memref<1x128xf32, #tpu.memory_space<vmem>>, vector<1x128xf32>
    %12 = vector.broadcast %11 : vector<1x128xf32> to vector<256x128xf32>
    %13 = arith.addf %10, %12 : vector<256x128xf32>
    %c0_11 = arith.constant 0 : index
    %c0_12 = arith.constant 0 : index
    %14 = vector.load %arg6[%c0_11, %c0_12] : memref<256x128xf32, #tpu.memory_space<vmem>>, vector<256x128xf32>
    tpu.vector_store %arg6[%c0_11, %c0_12], %13 {strides = array<i32>} : memref<256x128xf32, #tpu.memory_space<vmem>>, vector<256x128xf32>,
    return
  }
  func.func @transform_0(%arg0: i32) -> (i32, i32) {
    %c0_i32 = arith.constant 0 : i32
    %c0_i32_0 = arith.constant 0 : i32
    return %arg0, %c0_i32 : i32, i32
  }
  func.func @transform_1(%arg0: i32) -> (i32, i32) {
    %c0_i32 = arith.constant 0 : i32
    %c0_i32_0 = arith.constant 0 : i32
    %c0_i32_1 = arith.constant 0 : i32
    return %c0_i32, %c0_i32_0 : i32, i32
  }
  func.func @transform_2(%arg0: i32) -> (i32, i32) {
    %c0_i32 = arith.constant 0 : i32
    %c0_i32_0 = arith.constant 0 : i32
    %c0_i32_1 = arith.constant 0 : i32
    return %c0_i32, %c0_i32_0 : i32, i32
  }
  func.func @transform_3(%arg0: i32) -> (i32, i32) {
    %c0_i32 = arith.constant 0 : i32
    %c0_i32_0 = arith.constant 0 : i32
    %c0_i32_1 = arith.constant 0 : i32
    return %c0_i32, %c0_i32_0 : i32, i32
  }
  func.func @transform_4(%arg0: i32) -> (i32, i32) {
    %c0_i32 = arith.constant 0 : i32
    %c0_i32_0 = arith.constant 0 : i32
    %c0_i32_1 = arith.constant 0 : i32
    return %c0_i32, %c0_i32_0 : i32, i32
  }
  func.func @transform_5(%arg0: i32) -> (i32, i32) {
    %c0_i32 = arith.constant 0 : i32
    %c0_i32_0 = arith.constant 0 : i32
    return %arg0, %c0_i32 : i32, i32
  }
}

</mosaic_0001>

<bundles_post_ra>
// kernel: custom-call.22
= control target key start
LH: loop header
LB: loop body
LE: loop exit
PB: predicated region body
PF: predicated region fallthrough
CT: control target
= control target key end

     0   :  { %5 = vsyncpa [#allocation2], 0  ;;  %s944_s0 = inlined_call_operand.hbm [shape: f32[2,4,4], index: 0, kind: input, shape index: {}]   ;;  %s945_s1 = inlined_call_operand.vmem [shape: f32[2,4,4], index: 1, kind: output, shape index: {0}]   ;;  %s946_s2 = inlined_call_operand.hbm [shape: s32[2,4], index: 2, kind: output, shape index: {1}]   ;;  %s947_s3 = inlined_call_operand.vmem [shape: s32[2,4], index: 3, kind: output, shape index: {2}]  }
   0x1   :  { %7 = vsyncpa [#allocation2 + $0x1], 0 }
   0x2   :  { %8 = vsyncpa [#allocation3], 0 }
   0x3   :  { %10 = vsyncpa [#allocation3 + $0x1], 0  ;;  %s735_s12 = smov 0   ;;  %s737_s13 = smov 0  }
   0x4   :  { %s739_s14 = smov 0   ;;  %s741_s15 = smov 0  }
   0x5 LB: > { %s756_s16 = sadd.s32 4294967295, %s706_s15   ;;  %s536_s17 = sadd.s32 4294967294, %s706_s15   ;;  %s706_s15 = sphi %s741_s15, %s959_s15   ;;  %s702_s14 = sphi %s739_s14, %s958_s14   ;;  %s698_s13 = sphi %s737_s13, %s957_s13   ;;  %s694_s12 = sphi %s735_s12, %s956_s12  }
   0x6   : > { %s760_s18 = sadd.s32 1, %s706_s15   ;;  %s20_s19 = sshrl.u32 %s706_s15, 3 }
   0x7   : > { %s21_s20 = sshrl.u32 %s760_s18, 3  ;;  %s25_s21 = sadd.s32 1, %s702_s14 }
   0x8   : > { %s22_s22 = ssub.s32 %s20_s19, %s21_s20  ;;  %p35_p0 = scmp.ne.s32.totalorder %s702_s14, %s698_s13 }
   0x9   : > { %p23_p1 = scmp.eq.s32.totalorder %s22_s22, 0  ;;  %p36_p2 = scmp.eq.s32.totalorder %s756_s16, 1 }
   0xa   : > { %p41_p3 = scmp.ne.s32.totalorder %s698_s13, %s694_s12  ;;  %p42_p4 = scmp.eq.s32.totalorder %s536_s17, 1 }
   0xb   : > { %s771_s23 = scalar_select %p23_p1, %s702_s14, %s25_s21  }
   0xc   : > { %p773_p5 = por %p36_p2, %p35_p0  ;;  %p777_p6 = por %p42_p4, %p41_p3 }
   0xd   : > { %p565_p8 = scmp.lt.s32.totalorder %s706_s15, 2  ;;  %s87_s26 = sand.u32 1, %s706_s15  }
   0xe   : > { %s950_s25 = scalar_select %p777_p6, 1, 0 }
   0xf   : > { %s540_s27 = sshll.u32 %s706_s15, 6  ;;  %s539_s28 = sshll.u32 %s87_s26, 2 }
  0x10   : > { %s788_s4 = scalar_lea.hbm %s944_s0, %s540_s27  ;;  %s91_s5 = scalar_lea.vmem [#allocation1], %s539_s28 }
  0x11   : > { %s98_s6 = sshll.u32 %s91_s5, 4  ;;  %s88_s7 = scalar_lea.sflag [#allocation2], %s87_s26  ;;  %s791_s6 = int_to_ptr.vmem [resolvable:$true] %s98_s6 }
  0x12   : > { %s610_s8 = scalar_lea.hbm %s788_s4, 64  ;;  %s614_s11 = scalar_lea.hbm %s944_s0, 128 }
  0x13   : > { %p611_p11 = scmp.ne.s32.totalorder %s788_s4, %s610_s8  ;;  %p615_p0 = scmp.lt.u32.totalorder %s788_s4, %s944_s0 }
  0x14   : > { %p616_p1 = scmp.lt.u32.totalorder %s614_s11, %s610_s8  ;;  %p618_p3 = scmp.lt.u32.totalorder %s610_s8, %s788_s4 }
  0x15   : > { %p612_p12 = pnand %p611_p11, %p565_p8 }
  0x16   : > { %p617_p2 = por %p616_p1, %p615_p0 }
  0x17   : > { %p613_p13 = pneg %p612_p12 }
  0x18   : > { %p619_p4 = por %p618_p3, %p617_p2 }
  0x1a   : > { %p620_p7 = pnand %p619_p4, %p613_p13 }
  0x1c   : > { %623 = shalt.err (!%p620_p7)
}
  0x1d   : > { %s624_s20 = scalar_lea.vmem %s791_s6, 64  ;;  %s712_s21 = smov [#allocation1]  }
  0x1e   : > { %p625_p11 = scmp.ne.s32.totalorder %s791_s6, %s624_s20  ;;  %s628_s22 = sshll.u32 %s712_s21, 4  ;;  %s629_s22 = int_to_ptr.vmem [resolvable:$false] %s628_s22 }
  0x1f   : > { %s630_s26 = scalar_lea.vmem %s629_s22, 128  ;;  %p631_p10 = scmp.lt.s32.totalorder %s791_s6, %s629_s22 }
  0x20   : > { %p626_p12 = pnand %p625_p11, %p565_p8  ;;  %p632_p6 = scmp.lt.s32.totalorder %s630_s26, %s624_s20 }
  0x22   : > { %p627_p9 = pneg %p626_p12  ;;  %p633_p0 = por %p632_p6, %p631_p10 }
  0x24   : > { %p634_p1 = pnand %p633_p0, %p627_p9 }
  0x26   : > { %637 = shalt.err (!%p634_p1)
}
  0x27   : > { %558 = dma.hbm_to_vmem [thread:$0]  (%p565_p8), %s788_s4, 64, %s791_s6, %s88_s7  }
  0x28   : > { %p951_p7 = scmp.lt.s32.totalorder %s706_s15, 3  ;;  %p952_p13 = scmp.ge.s32.totalorder %s706_s15, 1 }
  0x2a   : > { %p104_p2 = pnand %p952_p13, %p951_p7 }
  0x2c   : > { %107 = sbr.rel (%p104_p2) target bundleno = 474 (0x1da), region = 20 }
  0x33   : > { %s109_s27 = sand.u32 1, %s756_s16  }
  0x34   : > { %s110_s28 = scalar_lea.sflag [#allocation2], %s109_s27 }
  0x35   : > { %686 = dma.done.wait %s110_s28, 64  }
  0x36   : > { %687 = vsyncadd %s110_s28, 4294967232  ;;  %s820_s29 = sshll.u32 %s109_s27, 2  ;;  %s145_s30 = sand.u32 7, %s756_s16   ;;  %v150_v0 = vlaneseq  ;;  %v713_v2 = vmov 0  }
  0x37   : > { %s826_s4 = scalar_lea.vmem [#allocation6], %s145_s30  ;;  %s128_s5 = sand.u32 1, %s698_s13  }
  0x38   : > { %v824_v1 = vshrl.u32 %v150_v0, 7  ;;  %149 = vst [vmem:[%s826_s4] sm:$0x1] %v713_v2  ;;  %s833_s6 = sshll.u32 %s128_s5, 1  ;;  %s119_s7 = scalar_lea.vmem [#allocation1], %s820_s29 }
  0x39   : > { %v139_v3 = vld [vmem:[%s119_s7] sm:$0xf]  ;;  %s123_s8 = scalar_lea.vmem [#allocation5], %s820_s29  ;;  %s130_s9 = scalar_lea.vmem [#allocation7], %s833_s6 }
  0x3a   : > { %154 = vst [vmem:[#allocation10] sm:$0xff] %v824_v1  ;;  %140 = vst [vmem:[#allocation0] sm:$0xf] %v139_v3  ;;  %s136_s10 = scalar_lea.vmem [#allocation9], %s833_s6  ;;  %s839_s11 = scalar_lea.vmem [#allocation8], %s145_s30 }
  0x3b   : > { %s841_s17 = smov 0  }
  0x41   : > { %v143_v4 = vld [vmem:[#allocation0] sm:$0xff] }
  0x42   : > { %144 = vst [vmem:[#allocation4] sm:$0xff] %v143_v4 }
  0x43 LB: >> { %vm170_vm0 = vcmp.lt.s32.totalorder %v824_v1, 4  ;;  %v848_v7 = vstv %s710_s17  ;;  %s211_s19 = ssub.s32 128, %s710_s17  ;;  %v217_v37 = vand.u32 127, %v150_v0  ;;  %v220_v39 = vld [vmem:[%s826_s4] ss:$0 sm:$0xff]  ;;  %s223_s20 = scalar_lea.vmem [#allocation4], %s710_s17  ;;  %s710_s17 = sphi %s841_s17, %s160_s17  }
  0x44   : >> { %vm169_vm1 = vcmp.ge.s32.totalorder %v824_v1, %v848_v7  ;;  %s229_s22 = scalar_lea.vmem [#allocation10], %s710_s17  ;;  %vm249_vm15 = vcmp.gt.s32.totalorder %v824_v1, %v848_v7  ;;  %s160_s17 = sadd.s32 1, %s710_s17  }
  0x45   : >> { %vm171_vm3 = vmand %vm169_vm1, %vm170_vm0  ;;  %vm241_vm12 = vcmp.gt.s32.totalorder %v217_v37, %v848_v7  ;;  %vm218_vm13 = vcmp.eq.s32.totalorder %v217_v37, %v848_v7  ;;  %v231_v41 = vld [vmem:[%s229_s22] ss:$0 sm:$0xff]  ;;  %p157_p6 = scmp.ge.s32.totalorder %s160_s17, 4  }
  0x46   : >> { %vm253_vm1 = vmand %vm249_vm15, %vm218_vm13  ;;  %s948_s28 = sshrl.u32 (%p157_p6), %s756_s16, 3  ;;  %s550_s30 = sshll.u32 (%p157_p6), %s756_s16, 2 }
  0x47   : > { %s551_s7 = sshll.u32 (%p157_p6), %s948_s28, 5 }
  0x49   : >> { %v165_v5 = vld [vmem:[#allocation4] sm:$0xff]  ;;  %v225_v40 = vld [vmem:[%s223_s20] ss:$0 sm:$0xff] }
  0x4a   : >> { %v166_v6 = vand.u32 2147483647, %v165_v5 }
  0x4c   : >> { %vm546_vm2 = vcmp.gt.f32.partialorder %v166_v6, -inf }
  0x4d   : >> { %vm173_vm4 = vmand %vm171_vm3, %vm546_vm2 }
  0x4e   : >> { %v174_v8 = vsel %vm173_vm4, %v824_v1, %v848_v7  ;;  %v175_v9 = vsel %vm173_vm4, %v166_v6, -inf }
  0x4f   : >> { %v176_v10 = vrot.slane %v175_v9, 1  ;;  %v177_v11 = vrot.slane %v174_v8, 1 }
  0x51   : >> { %vm178_vm5 = vcmp.ge.f32.partialorder %v176_v10, %v175_v9  ;;  %v181_v12 = vrot.slane %v176_v10, 1  ;;  %v182_v13 = vrot.slane %v177_v11, 1 }
  0x52   : >> { %v179_v14 = vsel %vm178_vm5, %v176_v10, %v175_v9  ;;  %v180_v15 = vsel %vm178_vm5, %v177_v11, %v174_v8 }
  0x53   : >> { %vm183_vm6 = vcmp.ge.f32.partialorder %v181_v12, %v179_v14  ;;  %v186_v16 = vrot.slane %v181_v12, 1  ;;  %v187_v17 = vrot.slane %v182_v13, 1 }
  0x54   : >> { %v184_v18 = vsel %vm183_vm6, %v181_v12, %v179_v14  ;;  %v185_v19 = vsel %vm183_vm6, %v182_v13, %v180_v15 }
  0x55   : >> { %vm188_vm7 = vcmp.ge.f32.partialorder %v186_v16, %v184_v18  ;;  %v191_v20 = vrot.slane %v186_v16, 1  ;;  %v192_v21 = vrot.slane %v187_v17, 1 }
  0x56   : >> { %v189_v22 = vsel %vm188_vm7, %v186_v16, %v184_v18  ;;  %v190_v23 = vsel %vm188_vm7, %v187_v17, %v185_v19 }
  0x57   : >> { %vm193_vm8 = vcmp.ge.f32.partialorder %v191_v20, %v189_v22  ;;  %v196_v24 = vrot.slane %v191_v20, 1  ;;  %v197_v25 = vrot.slane %v192_v21, 1 }
  0x58   : >> { %v194_v26 = vsel %vm193_vm8, %v191_v20, %v189_v22  ;;  %v195_v27 = vsel %vm193_vm8, %v192_v21, %v190_v23 }
  0x59   : >> { %vm198_vm9 = vcmp.ge.f32.partialorder %v196_v24, %v194_v26  ;;  %v201_v28 = vrot.slane %v196_v24, 1  ;;  %v202_v29 = vrot.slane %v197_v25, 1 }
  0x5a   : >> { %v199_v30 = vsel %vm198_vm9, %v196_v24, %v194_v26  ;;  %v200_v31 = vsel %vm198_vm9, %v197_v25, %v195_v27 }
  0x5b   : >> { %vm203_vm10 = vcmp.ge.f32.partialorder %v201_v28, %v199_v30  ;;  %v206_v32 = vrot.slane %v201_v28, 1  ;;  %v207_v33 = vrot.slane %v202_v29, 1 }
  0x5c   : >> { %v204_v34 = vsel %vm203_vm10, %v201_v28, %v199_v30  ;;  %v205_v35 = vsel %vm203_vm10, %v202_v29, %v200_v31 }
  0x5d   : >> { %vm208_vm11 = vcmp.ge.f32.partialorder %v206_v32, %v204_v34 }
  0x5e   : >> { %v210_v36 = vsel %vm208_vm11, %v207_v33, %v205_v35 }
  0x5f   : >> { %212 = vrot.lane.b32.xlu0 %v210_v36, %s211_s19  ;;  %s341_s19 = scalar_lea.vmem (%p157_p6), %s945_s1, %s550_s30 }
  0xd1   : >> { %v213_v38 = vpop.permute.xlu0 %212 }
  0xd2   : >> { %555 = vpush %v213_v38 }
 0x103   : >> { %s556_s21 = spop %555 }
 0x104   : >> { %v219_v42 = vstv %s556_s21  ;;  %s224_s26 = scalar_lea.vmem [#allocation4], %s556_s21  ;;  %s230_s27 = scalar_lea.vmem [#allocation10], %s556_s21 }
 0x105   : >> { %v226_v43 = vld [vmem:[%s224_s26] ss:$0 sm:$0xff]  ;;  %v221_v45 = vsel %vm218_vm13, %v219_v42, %v220_v39 }
 0x106   : >> { %v232_v44 = vld [vmem:[%s230_s27] ss:$0 sm:$0xff]  ;;  %227 = vst [vmem:[%s224_s26] sm:$0x1] %v225_v40  ;;  %vm235_vm14 = vcmp.ne.f32.partialorder %v226_v43, 0.0  ;;  %222 = vst [vmem:[%s826_s4] sm:$0x1] %v221_v45  ;;  %v242_v52 = vsel %vm241_vm12, %v226_v43, 0.0 }
 0x107   : >> { %233 = vst [vmem:[%s230_s27] sm:$0x1] %v231_v41  ;;  %228 = vst [vmem:[%s223_s20] sm:$0x1] %v226_v43  ;;  %s383_s26 = sshll.u32 (%p157_p6), %s130_s9, 4  ;;  %s332_s27 = scalar_lea.sflag (%p157_p6), [#allocation3], %s128_s5  ;;  %s384_s26 = int_to_ptr.vmem [resolvable:$true] %s383_s26 }
 0x108   : >> { %234 = vst [vmem:[%s229_s22] sm:$0x1] %v232_v44  ;;  %vm236_vm0 = vmand %vm218_vm13, %vm235_vm14  ;;  %s891_s22 = scalar_lea.hbm (%p157_p6), %s946_s2, %s551_s7  ;;  %s638_s28 = scalar_lea.vmem (%p157_p6), %s384_s26, 32 }
 0x109   : >> { %v237_v46 = vsel %vm236_vm0, %v226_v43, 1.0  ;;  %p639_p8 = scmp.ne.s32.totalorder (%p157_p6), %s384_s26, %s638_s28  ;;  %s714_s4 = smov (%p157_p6), [#allocation7]  }
 0x10a   : >> { %v250_v47 = vsel %vm249_vm15, %v237_v46, 1.0  ;;  %s642_s30 = sshll.u32 (%p157_p6), %s714_s4, 4  ;;  %s643_s30 = int_to_ptr.vmem [resolvable:$false] %s642_s30 }
 0x10b   : >> { %608 = vrcp.f32 %v250_v47  ;;  %p640_p9 = pnand (%p157_p6), %p639_p8, %p773_p5  ;;  %s644_s29 = scalar_lea.vmem (%p157_p6), %s643_s30, 64 }
 0x10c   : > { %p645_p3 = scmp.lt.s32.totalorder (%p157_p6), %s384_s26, %s643_s30  ;;  %p646_p4 = scmp.lt.s32.totalorder (%p157_p6), %s644_s29, %s638_s28 }
 0x10d   : > { %v318_v58 = vld [vmem:[#allocation6] sm:$0x3] (%p157_p6)  ;;  %p641_p10 = pneg (%p157_p6), %p640_p9 }
 0x10e   : >> { %v246_v49 = vld [vmem:[#allocation4] sm:$0xff]  ;;  %320 = vst [vmem:[%s130_s9] sm:$0x3] (%p157_p6), %v318_v58  ;;  %p647_p11 = por (%p157_p6), %p646_p4, %p645_p3 }
 0x10f   : > { %v260_v56 = vld [vmem:[#allocation10] sm:$0xff] (%p157_p6) }
 0x110   : > { %p648_p12 = pnand (%p157_p6), %p647_p11, %p641_p10 }
 0x115   : >> { %v609_v48 = vpop.eup %608 }
 0x116   : >> { %v252_v50 = vmul.f32 %v609_v48, %v246_v49 }
 0x118   : >> { %v254_v51 = vsel %vm253_vm1, %v252_v50, 0.0 }
 0x119   : >> { %255 = vadd.xlane.f32.xlu0 %v254_v51 }
 0x146   : > { %276 = vxpose.xlu0.b32.start.end [1/1] (short) (narrow) (%p157_p6), %v260_v56, 8 }
 0x1a5   : > { %159 = sbr.rel (!%p157_p6) target bundleno = 67 (0x43), region = 173 }
 0x1a6   : >> { %v256_v53 = vpop.xlane.xlu0 %255 }
 0x1a7   : >> { %v257_v54 = vmul.f32 %v256_v53, %v242_v52 }
 0x1a9   : >> { %v258_v55 = vsub.f32 %v252_v50, %v257_v54 }
 0x1ab   : >> { %259 = vst [vmem:[#allocation4] sm:$0xff] %v258_v55 }
 0x1b2   : > { %v312_v57 = vld [vmem:[#allocation4] sm:$0xf] }
 0x1b3   : > { %314 = vst [vmem:[%s123_s8] sm:$0xf] %v312_v57 }
 0x1ba   : > { %v357_v59 = vld [vmem:[%s123_s8] sm:$0xf] }
 0x1bb   : > { %358 = vst [vmem:[%s341_s19] sm:$0xf] %v357_v59 }
 0x1bc   : > { %651 = shalt.err (!%p648_p12)
}
 0x1bd   : > { %s652_s5 = scalar_lea.hbm %s891_s22, 32  ;;  %s656_s7 = scalar_lea.hbm %s946_s2, 32 }
 0x1be   : > { %p653_p0 = scmp.ne.s32.totalorder %s891_s22, %s652_s5  ;;  %p657_p13 = scmp.lt.u32.totalorder %s891_s22, %s946_s2 }
 0x1bf   : > { %p658_p2 = scmp.lt.u32.totalorder %s656_s7, %s652_s5  ;;  %p660_p8 = scmp.lt.u32.totalorder %s652_s5, %s891_s22 }
 0x1c0   : > { %p654_p1 = pnand %p653_p0, %p773_p5 }
 0x1c1   : > { %p659_p6 = por %p658_p2, %p657_p13 }
 0x1c2   : > { %p655_p7 = pneg %p654_p1 }
 0x1c3   : > { %p661_p9 = por %p660_p8, %p659_p6 }
 0x1c5   : > { %p662_p10 = pnand %p661_p9, %p655_p7 }
 0x1c7   : > { %665 = shalt.err (!%p662_p10)
}
 0x1c8   : > { %559 = dma.vmem_to_hbm [thread:$0]  (%p773_p5), %s384_s26, 32, %s891_s22, %s332_s27   ;;  %v292_v60 = vpop.trf.xlu0 }
 0x1c9   : > { %308 = vst [vmem:[%s839_s11] sm:$0x1] %v292_v60  ;;  %s953_s28 = sshrl.u32 (%p773_p5), %s756_s16, 3 }
 0x1ca   : > { %s552_s20 = sshll.u32 (%p773_p5), %s953_s28, 1 }
 0x1cb   : > { %389 = sbr.rel (!%p773_p5) target bundleno = 474 (0x1da), region = 66  ;;  %s392_s30 = scalar_lea.vmem (%p773_p5), %s947_s3, %s552_s20 }
 0x1d0   : > { %v324_v61 = vld [vmem:[#allocation8] sm:$0x3] }
 0x1d1   : > { %326 = vst [vmem:[%s136_s10] sm:$0x3] %v324_v61 }
 0x1d8   : > { %v408_v62 = vld [vmem:[%s136_s10] sm:$0x3] }
 0x1d9   : > { %409 = vst [vmem:[%s392_s30] sm:$0x3] %v408_v62 }
 0x1da PF: > { %s436_s11 = sand.u32 1, %s694_s12   ;;  %p954_p3 = scmp.ne.s32.totalorder %s950_s25, 0 }
 0x1db   : > { %p955_p4 = scmp.ge.s32.totalorder %s706_s15, 2  ;;  %s437_s24 = scalar_lea.sflag [#allocation3], %s436_s11 }
 0x1dd   : > { %p562_p5 = pnand %p955_p4, %p954_p3 }
 0x1df   : > { %689 = dma.done.wait (!%p562_p5), %s437_s24, 32  }
 0x1e0   : > { %691 = vsyncadd (!%p562_p5), %s437_s24, 4294967264  ;;  %p13_p11 = scmp.ge.s32.totalorder %s760_s18, 4   ;;  %s956_s12 = smov %s698_s13 }
 0x1e1   : > { %s957_s13 = smov %s702_s14  ;;  %s958_s14 = smov %s771_s23 }
 0x1e2   : > { %s959_s15 = smov %s760_s18  ;;  %15 = sbr.rel (!%p13_p11) target bundleno = 5 (0x5), region = 184 }
 0x1e9   :  { %449 = vsyncpa [#allocation2], 1 }
 0x1ea   :  { %451 = vsyncpa [#allocation2 + $0x1], 1 }
 0x1eb   :  { %452 = vsyncpa [#allocation3], 1 }
 0x1ec   :  { %454 = vsyncpa [#allocation3 + $0x1], 1 }

// kernel: custom-call.24
= control target key start
LH: loop header
LB: loop body
LE: loop exit
PB: predicated region body
PF: predicated region fallthrough
CT: control target
= control target key end

     0   :  { %s353_s6 = smov 0   ;;  %s355_s7 = smov 0   ;;  %s400_s0 = inlined_call_operand.vmem [shape: f32[2,1,4,4], index: 0, kind: input, shape index: {}]   ;;  %s401_s1 = inlined_call_operand.vmem [shape: f32[2,1,4,4], index: 1, kind: output, shape index: {}]  }
   0x1   :  { %s357_s8 = smov 0  }
   0x2 LB: > { %s279_s9 = sadd.s32 4294967295, %s340_s8   ;;  %s33_s10 = sadd.s32 1, %s336_s7  ;;  %s340_s8 = sphi %s357_s8, %s7_s8   ;;  %s336_s7 = sphi %s355_s7, %s403_s7   ;;  %s332_s6 = sphi %s353_s6, %s402_s6  }
   0x3   : > { %p35_p0 = scmp.ge.s32.totalorder %s33_s10, 2  ;;  %p281_p1 = scmp.ge.s32.totalorder %s340_s8, 2 }
   0x4   : > { %s49_s11 = sand.u32 (!%p281_p1), 1, %s340_s8   ;;  %s283_s12 = sshll.u32 (!%p281_p1), %s336_s7, 2 }
   0x5   : > { %s405_s10 = smov (%p35_p0, %s33_s10), 0  ;;  %47 = sbr.rel (%p281_p1) target bundleno = 12 (0xc), region = 16 }
   0x6   : > { %s282_s13 = sshll.u32 (!%p281_p1), %s49_s11, 2  ;;  %s56_s16 = scalar_lea.vmem (!%p281_p1), %s400_s0, %s283_s12 }
   0x7   : > { %v72_v0 = vld [vmem:[%s56_s16] sm:$0xf] (!%p281_p1)  ;;  %s51_s17 = scalar_lea.vmem (!%p281_p1), [#allocation1], %s282_s13 }
   0x8   : > { %73 = vst [vmem:[%s51_s17] sm:$0xf] (!%p281_p1), %v72_v0 }
   0xc PF: > { %p284_p2 = scmp.ge.s32.totalorder %s340_s8, 1  ;;  %p89_p3 = scmp.lt.s32.totalorder %s340_s8, 3 }
   0xe   : > { %p90_p4 = pnand %p284_p2, %p89_p3 }
  0x10   : > { %93 = sbr.rel (%p90_p4) target bundleno = 656 (0x290), region = 50 }
  0x17   : > { %s380_s18 = sand.u32 1, %s279_s9   ;;  %v111_v1 = vlaneseq  ;;  %v342_v11 = vmov -1.0   ;;  %s288_s22 = sshll.u32 %s332_s6, 2 }
  0x18   : > { %s285_s19 = sshll.u32 %s380_s18, 2  ;;  %s188_s25 = scalar_lea.vmem %s401_s1, %s288_s22 }
  0x19   : > { %s102_s20 = scalar_lea.vmem [#allocation1], %s285_s19  ;;  %v112_v3 = vand.u32 127, %v111_v1  ;;  %v115_v4 = vshrl.u32 %v111_v1, 7  ;;  %s106_s21 = scalar_lea.vmem [#allocation3], %s285_s19 }
  0x1a   : > { %v109_v2 = vld [vmem:[%s102_s20] sm:$0xf] }
  0x1b   : > { %110 = vst [vmem:[#allocation0] sm:$0xf] %v109_v2  ;;  %vm113_vm0 = vcmp.lt.s32.totalorder %v112_v3, 4  ;;  %vm122_vm1 = vcmp.ge.s32.totalorder %v115_v4, %v112_v3  ;;  %vm117_vm2 = vcmp.eq.s32.totalorder %v115_v4, %v112_v3  ;;  %vm136_vm4 = vcmp.eq.s32.totalorder %v112_v3, 0 }
  0x1c   : > { %vm123_vm3 = vmand %vm122_vm1, %vm113_vm0  ;;  %vm133_vm5 = vcmp.eq.s32.totalorder %v112_v3, %v115_v4  ;;  %v137_v12 = vsel %vm136_vm4, 1.0, %v342_v11  ;;  %vm144_vm6 = vcmp.eq.s32.totalorder %v112_v3, 1  ;;  %vm154_vm7 = vcmp.eq.s32.totalorder %v112_v3, 2 }
  0x1d   : > { %v138_v13 = vsel %vm133_vm5, %v137_v12, 0.0  ;;  %vm164_vm8 = vcmp.eq.s32.totalorder %v112_v3, 3 }
  0x22   : > { %v118_v5 = vld [vmem:[#allocation0] sm:$0xff] }
  0x23   : > { %v119_v6 = vsel %vm117_vm2, %v118_v5, 0.0  ;;  %v124_v7 = vsel %vm123_vm3, %v118_v5, 0.0 }
  0x24   : > { %120 = vadd.xlane.f32.xlu0 %v119_v6 }
  0xb1   : > { %v121_v8 = vpop.xlane.xlu0 %120 }
  0xb2   : > { %316 = vrcp.f32 %v121_v8  ;;  %vm171_vm9 = vweird.f32 %v121_v8 }
  0xbc   : > { %v317_v9 = vpop.eup %316 }
  0xbd   : > { %v126_v10 = vmul.f32 %v317_v9, %v124_v7 }
  0xbf   : > { %127 = vst [vmem:[#allocation4] sm:$0xff] %v126_v10 }
  0xc6   : > { %v140_v14 = vld [vmem:[#allocation4 + $0x1] ss:$0 sm:$0xff]  ;;  %v150_v17 = vld [vmem:[#allocation4 + $0x2] ss:$0 sm:$0xff]  ;;  %v160_v22 = vld [vmem:[#allocation4 + $0x3] ss:$0 sm:$0xff] }
  0xc7   : > { %v141_v15 = vxor.u32 2147483648, %v140_v14  ;;  %v151_v19 = vxor.u32 2147483648, %v150_v17  ;;  %v161_v24 = vxor.u32 2147483648, %v160_v22 }
  0xc9   : > { %v145_v16 = vmul.f32 %v141_v15, %v138_v13 }
  0xcb   : > { %146 = vadd.xlane.f32.xlu0 %v145_v16 }
 0x158   : > { %v147_v18 = vpop.xlane.xlu0 %146 }
 0x159   : > { %v148_v20 = vsel %vm144_vm6, %v147_v18, %v138_v13 }
 0x15a   : > { %v155_v21 = vmul.f32 %v151_v19, %v148_v20 }
 0x15c   : > { %156 = vadd.xlane.f32.xlu1 %v155_v21 }
 0x1e9   : > { %v157_v23 = vpop.xlane.xlu1 %156 }
 0x1ea   : > { %v158_v25 = vsel %vm154_vm7, %v157_v23, %v148_v20 }
 0x1eb   : > { %v165_v26 = vmul.f32 %v161_v24, %v158_v25 }
 0x1ed   : > { %166 = vadd.xlane.f32.xlu1 %v165_v26 }
 0x27a   : > { %v167_v27 = vpop.xlane.xlu1 %166 }
 0x27b   : > { %v168_v28 = vsel %vm164_vm8, %v167_v27, %v158_v25 }
 0x27c   : > { %v170_v29 = vmul.f32 %v317_v9, %v168_v28 }
 0x27e   : > { %v172_v30 = vsel %vm171_vm9, %v168_v28, %v170_v29 }
 0x27f   : > { %173 = vst [vmem:[#allocation2] sm:$0xff] %v172_v30 }
 0x286   : > { %v177_v31 = vld [vmem:[#allocation2] sm:$0xf] }
 0x287   : > { %179 = vst [vmem:[%s106_s21] sm:$0xf] %v177_v31 }
 0x28e   : > { %v204_v32 = vld [vmem:[%s106_s21] sm:$0xf] }
 0x28f   : > { %205 = vst [vmem:[%s188_s25] sm:$0xf] %v204_v32 }
 0x290 PF: > { %s7_s8 = sadd.s32 1, %s340_s8   ;;  %s402_s6 = smov %s336_s7 }
 0x291   : > { %p4_p5 = scmp.ge.s32.totalorder %s7_s8, 4   ;;  %s403_s7 = smov %s405_s10 }
 0x293   :  { %6 = sbr.rel (!%p4_p5) target bundleno = 2 (0x2), region = 113 }

// kernel: custom-call.23
= control target key start
LH: loop header
LB: loop body
LE: loop exit
PB: predicated region body
PF: predicated region fallthrough
CT: control target
= control target key end

     0   :  { %s352_s6 = smov 0   ;;  %s354_s7 = smov 0   ;;  %s399_s0 = inlined_call_operand.vmem [shape: f32[2,1,4,4], index: 0, kind: input, shape index: {}]   ;;  %s400_s1 = inlined_call_operand.vmem [shape: f32[2,1,4,4], index: 1, kind: output, shape index: {}]  }
   0x1   :  { %s356_s8 = smov 0  }
   0x2 LB: > { %s278_s9 = sadd.s32 4294967295, %s339_s8   ;;  %s33_s10 = sadd.s32 1, %s335_s7  ;;  %s339_s8 = sphi %s356_s8, %s7_s8   ;;  %s335_s7 = sphi %s354_s7, %s402_s7   ;;  %s331_s6 = sphi %s352_s6, %s401_s6  }
   0x3   : > { %p35_p0 = scmp.ge.s32.totalorder %s33_s10, 2  ;;  %p280_p1 = scmp.ge.s32.totalorder %s339_s8, 2 }
   0x4   : > { %s49_s11 = sand.u32 (!%p280_p1), 1, %s339_s8   ;;  %s282_s12 = sshll.u32 (!%p280_p1), %s335_s7, 2 }
   0x5   : > { %s404_s10 = smov (%p35_p0, %s33_s10), 0  ;;  %47 = sbr.rel (%p280_p1) target bundleno = 12 (0xc), region = 16 }
   0x6   : > { %s281_s13 = sshll.u32 (!%p280_p1), %s49_s11, 2  ;;  %s56_s16 = scalar_lea.vmem (!%p280_p1), %s399_s0, %s282_s12 }
   0x7   : > { %v72_v0 = vld [vmem:[%s56_s16] sm:$0xf] (!%p280_p1)  ;;  %s51_s17 = scalar_lea.vmem (!%p280_p1), [#allocation1], %s281_s13 }
   0x8   : > { %73 = vst [vmem:[%s51_s17] sm:$0xf] (!%p280_p1), %v72_v0 }
   0xc PF: > { %p283_p2 = scmp.ge.s32.totalorder %s339_s8, 1  ;;  %p89_p3 = scmp.lt.s32.totalorder %s339_s8, 3 }
   0xe   : > { %p90_p4 = pnand %p283_p2, %p89_p3 }
  0x10   : > { %93 = sbr.rel (%p90_p4) target bundleno = 656 (0x290), region = 50 }
  0x17   : > { %s379_s18 = sand.u32 1, %s278_s9   ;;  %v111_v1 = vlaneseq  ;;  %v341_v11 = vmov -1.0   ;;  %s287_s22 = sshll.u32 %s331_s6, 2 }
  0x18   : > { %s284_s19 = sshll.u32 %s379_s18, 2  ;;  %s187_s25 = scalar_lea.vmem %s400_s1, %s287_s22 }
  0x19   : > { %s102_s20 = scalar_lea.vmem [#allocation1], %s284_s19  ;;  %v112_v3 = vand.u32 127, %v111_v1  ;;  %v115_v4 = vshrl.u32 %v111_v1, 7  ;;  %s106_s21 = scalar_lea.vmem [#allocation3], %s284_s19 }
  0x1a   : > { %v109_v2 = vld [vmem:[%s102_s20] sm:$0xf] }
  0x1b   : > { %110 = vst [vmem:[#allocation0] sm:$0xf] %v109_v2  ;;  %vm113_vm0 = vcmp.lt.s32.totalorder %v112_v3, 4  ;;  %vm122_vm1 = vcmp.le.s32.totalorder %v115_v4, %v112_v3  ;;  %vm117_vm2 = vcmp.eq.s32.totalorder %v115_v4, %v112_v3  ;;  %vm136_vm4 = vcmp.eq.s32.totalorder %v112_v3, 3 }
  0x1c   : > { %vm123_vm3 = vmand %vm122_vm1, %vm113_vm0  ;;  %vm133_vm5 = vcmp.eq.s32.totalorder %v112_v3, %v115_v4  ;;  %v137_v12 = vsel %vm136_vm4, 1.0, %v341_v11  ;;  %vm144_vm6 = vcmp.eq.s32.totalorder %v112_v3, 2  ;;  %vm154_vm7 = vcmp.eq.s32.totalorder %v112_v3, 1 }
  0x1d   : > { %v138_v13 = vsel %vm133_vm5, %v137_v12, 0.0  ;;  %vm163_vm8 = vcmp.eq.s32.totalorder %v112_v3, 0 }
  0x22   : > { %v118_v5 = vld [vmem:[#allocation0] sm:$0xff] }
  0x23   : > { %v119_v6 = vsel %vm117_vm2, %v118_v5, 0.0  ;;  %v124_v7 = vsel %vm123_vm3, %v118_v5, 0.0 }
  0x24   : > { %120 = vadd.xlane.f32.xlu0 %v119_v6 }
  0xb1   : > { %v121_v8 = vpop.xlane.xlu0 %120 }
  0xb2   : > { %315 = vrcp.f32 %v121_v8  ;;  %vm170_vm9 = vweird.f32 %v121_v8 }
  0xbc   : > { %v316_v9 = vpop.eup %315 }
  0xbd   : > { %v126_v10 = vmul.f32 %v316_v9, %v124_v7 }
  0xbf   : > { %127 = vst [vmem:[#allocation4] sm:$0xff] %v126_v10 }
  0xc6   : > { %v140_v14 = vld [vmem:[#allocation4 + $0x2] ss:$0 sm:$0xff]  ;;  %v150_v17 = vld [vmem:[#allocation4 + $0x1] ss:$0 sm:$0xff]  ;;  %v159_v22 = vld [vmem:[#allocation4] ss:$0 sm:$0xff] }
  0xc7   : > { %v141_v15 = vxor.u32 2147483648, %v140_v14  ;;  %v151_v19 = vxor.u32 2147483648, %v150_v17  ;;  %v160_v24 = vxor.u32 2147483648, %v159_v22 }
  0xc9   : > { %v145_v16 = vmul.f32 %v141_v15, %v138_v13 }
  0xcb   : > { %146 = vadd.xlane.f32.xlu0 %v145_v16 }
 0x158   : > { %v147_v18 = vpop.xlane.xlu0 %146 }
 0x159   : > { %v148_v20 = vsel %vm144_vm6, %v147_v18, %v138_v13 }
 0x15a   : > { %v155_v21 = vmul.f32 %v151_v19, %v148_v20 }
 0x15c   : > { %156 = vadd.xlane.f32.xlu1 %v155_v21 }
 0x1e9   : > { %v157_v23 = vpop.xlane.xlu1 %156 }
 0x1ea   : > { %v158_v25 = vsel %vm154_vm7, %v157_v23, %v148_v20 }
 0x1eb   : > { %v164_v26 = vmul.f32 %v160_v24, %v158_v25 }
 0x1ed   : > { %165 = vadd.xlane.f32.xlu1 %v164_v26 }
 0x27a   : > { %v166_v27 = vpop.xlane.xlu1 %165 }
 0x27b   : > { %v167_v28 = vsel %vm163_vm8, %v166_v27, %v158_v25 }
 0x27c   : > { %v169_v29 = vmul.f32 %v316_v9, %v167_v28 }
 0x27e   : > { %v171_v30 = vsel %vm170_vm9, %v167_v28, %v169_v29 }
 0x27f   : > { %172 = vst [vmem:[#allocation2] sm:$0xff] %v171_v30 }
 0x286   : > { %v176_v31 = vld [vmem:[#allocation2] sm:$0xf] }
 0x287   : > { %178 = vst [vmem:[%s106_s21] sm:$0xf] %v176_v31 }
 0x28e   : > { %v203_v32 = vld [vmem:[%s106_s21] sm:$0xf] }
 0x28f   : > { %204 = vst [vmem:[%s187_s25] sm:$0xf] %v203_v32 }
 0x290 PF: > { %s7_s8 = sadd.s32 1, %s339_s8   ;;  %s401_s6 = smov %s335_s7 }
 0x291   : > { %p4_p5 = scmp.ge.s32.totalorder %s7_s8, 4   ;;  %s402_s7 = smov %s404_s10 }
 0x293   :  { %6 = sbr.rel (!%p4_p5) target bundleno = 2 (0x2), region = 112 }

// kernel: _forward_impl.5
= control target key start
LH: loop header
LB: loop body
LE: loop exit
PB: predicated region body
PF: predicated region fallthrough
CT: control target
= control target key end

     0   :  { %vm156_vm0 = vcmask 261120   ;;  %vm453_vm1 = vcmask 523264   ;;  %s1189_s1 = inlined_call_operand.vmem [shape: bf16[32,64], index: 1, kind: input, shape index: {}]   ;;  %s1190_s0 = inlined_call_operand.vmem [shape: bf16[256,32], index: 0, kind: input, shape index: {}]   ;;  %s1191_s3 = inlined_call_operand.vmem [shape: bf16[64,128], index: 3, kind: input, shape index: {}]   ;;  %s1192_s2 = inlined_call_operand.vmem [shape: f32[1,64], index: 2, kind: input, shape index: {}]   ;;  %s1193_s4 = inlined_call_operand.vmem [shape: f32[1,128], index: 4, kind: input, shape index: {}]   ;;  %s1194_s5 = inlined_call_operand.vmem [shape: f32[256,128], index: 5, kind: output, shape index: {}]  }
   0x1   :  { %v869_v0 = vld [vmem:[%s1189_s1] sm:$0xff]   ;;  %v870_v1 = vld [vmem:[%s1189_s1 + $0x8] sm:$0xff]   ;;  %v873_v4 = vld [vmem:[%s1190_s0 + $0x10] sm:$0xff]  }
   0x2   :  { %793 = vmatprep.subr.bf16.mxu0 %v869_v0  ;;  %v871_v2 = vld [vmem:[%s1190_s0] sm:$0xff]   ;;  %v872_v3 = vld [vmem:[%s1190_s0 + $0x8] sm:$0xff]   ;;  %v874_v5 = vld [vmem:[%s1190_s0 + $0x18] sm:$0xff]  }
   0x3   :  { %794 = vmatpush3.bf16.msra.mxu0 %v869_v0  ;;  %797 = vmatprep.mubr.msk.bf16.mxu0 %vm156_vm0, %v871_v2  ;;  %v875_v6 = vld [vmem:[%s1190_s0 + $0x20] sm:$0xff]   ;;  %v888_v8 = vld [vmem:[%s1191_s3 + $0x8] sm:$0xff]   ;;  %v877_v10 = vld [vmem:[%s1190_s0 + $0x30] sm:$0xff]  }
   0x4   :  { %795 = vmatprep.subr.bf16.mxu0 %v870_v1  ;;  %v887_v7 = vld [vmem:[%s1191_s3] sm:$0xff]   ;;  %v876_v9 = vld [vmem:[%s1190_s0 + $0x28] sm:$0xff]   ;;  %v878_v11 = vld [vmem:[%s1190_s0 + $0x38] sm:$0xff]  }
   0x5   :  { %829 = vmatprep.subr.bf16.mxu1 %v887_v7  ;;  %v879_v12 = vld [vmem:[%s1190_s0 + $0x40] sm:$0xff]   ;;  %v880_v13 = vld [vmem:[%s1190_s0 + $0x48] sm:$0xff]   ;;  %v881_v14 = vld [vmem:[%s1190_s0 + $0x50] sm:$0xff]  }
   0x6   :  { %830 = vmatpush3.bf16.msra.mxu1 %v887_v7  ;;  %v882_v15 = vld [vmem:[%s1190_s0 + $0x58] sm:$0xff]   ;;  %v883_v16 = vld [vmem:[%s1190_s0 + $0x60] sm:$0xff]   ;;  %v884_v17 = vld [vmem:[%s1190_s0 + $0x68] sm:$0xff]  }
   0x7   :  { %796 = vmatpush3.bf16.msra.mxu0 %v870_v1  ;;  %831 = vmatprep.subr.bf16.mxu1 %v888_v8  ;;  %v885_v18 = vld [vmem:[%s1190_s0 + $0x70] sm:$0xff]   ;;  %v886_v19 = vld [vmem:[%s1190_s0 + $0x78] sm:$0xff]   ;;  %v1006_v22 = vld [vmem:[%s1192_s2] ss:$0 sm:$0xff] }
   0x8   :  { %v889_v20 = vld [vmem:[%s1191_s3 + $0x10] sm:$0xff]   ;;  %v890_v21 = vld [vmem:[%s1191_s3 + $0x18] sm:$0xff]  }
   0xa   :  { %798 = vmatmul.mubr.msk.bf16.vlgmr.msra.gmra.mrb[0].mxu0 %vm156_vm0, %v872_v3  ;;  %832 = vmatpush3.bf16.msra.mxu1 %v888_v8 }
   0xb   :  { %801 = vmatprep.mubr.msk.bf16.mxu0 %vm156_vm0, %v873_v4  ;;  %833 = vmatprep.subr.bf16.mxu1 %v889_v20 }
   0xe   :  { %834 = vmatpush3.bf16.msra.mxu1 %v889_v20 }
   0xf   :  { %835 = vmatprep.subr.bf16.mxu1 %v890_v21 }
  0x12   :  { %802 = vmatmul.mubr.msk.bf16.gmra.mrb[4].mxu0 %vm156_vm0, %v874_v5  ;;  %836 = vmatpush3.bf16.msra.mxu1 %v890_v21 }
  0x13   :  { %805 = vmatprep.mubr.msk.bf16.mxu0 %vm156_vm0, %v875_v6 }
  0x1a   :  { %806 = vmatmul.mubr.msk.bf16.gmra.mrb[8].mxu0 %vm156_vm0, %v876_v9 }
  0x1b   :  { %809 = vmatprep.mubr.msk.bf16.mxu0 %vm156_vm0, %v877_v10 }
  0x22   :  { %810 = vmatmul.mubr.msk.bf16.gmra.mrb[12].mxu0 %vm156_vm0, %v878_v11 }
  0x23   :  { %813 = vmatprep.mubr.msk.bf16.mxu0 %vm156_vm0, %v879_v12 }
  0x2a   :  { %814 = vmatmul.mubr.msk.bf16.gmra.mrb[16].mxu0 %vm156_vm0, %v880_v13 }
  0x2b   :  { %817 = vmatprep.mubr.msk.bf16.mxu0 %vm156_vm0, %v881_v14 }
  0x32   :  { %818 = vmatmul.mubr.msk.bf16.gmra.mrb[20].mxu0 %vm156_vm0, %v882_v15 }
  0x33   :  { %821 = vmatprep.mubr.msk.bf16.mxu0 %vm156_vm0, %v883_v16 }
  0x3a   :  { %822 = vmatmul.mubr.msk.bf16.gmra.mrb[24].mxu0 %vm156_vm0, %v884_v17 }
  0x3b   :  { %825 = vmatprep.mubr.msk.bf16.mxu0 %vm156_vm0, %v885_v18 }
  0x42   :  { %826 = vmatmul.mubr.msk.bf16.gmra.mrb[28].mxu0 %vm156_vm0, %v886_v19 }
  0xdd   :  { %v799_v23 = vpop.f32.mrb[0].mxu0 }
  0xde   :  { %v248_v24 = vadd.f32 %v799_v23, %v1006_v22  ;;  %v239_v25 = vpop.f32.mrb[1].mxu0 }
  0xdf   :  { %v240_v26 = vadd.f32 %v1006_v22, %v239_v25  ;;  %v800_v27 = vpop.f32.mrb[2].mxu0 }
  0xe0   :  { %v251_v28 = vadd.f32 %v800_v27, %v1006_v22  ;;  %v242_v29 = vpop.f32.mrb[3].mxu0  ;;  %v368_v31 = vmax.f32 %v248_v24, 0.0 }
  0xe1   :  { %v243_v30 = vadd.f32 %v1006_v22, %v242_v29  ;;  %v366_v33 = vmax.f32 %v240_v26, 0.0 }
  0xe2   :  { %v369_v32 = vmax.f32 %v251_v28, 0.0 }
  0xe3   :  { %v367_v34 = vmax.f32 %v243_v30, 0.0 }
  0xe4   :  { %v399_v35 = vpack.c.bf16 %v369_v32, %v368_v31 }
  0xe5   :  { %v803_v36 = vpop.f32.mrb[4].mxu0  ;;  %v398_v37 = vpack.c.bf16 %v367_v34, %v366_v33 }
  0xe6   :  { %v264_v38 = vadd.f32 %v803_v36, %v1006_v22  ;;  %v255_v39 = vpop.f32.mrb[5].mxu0 }
  0xe7   :  { %v256_v40 = vadd.f32 %v1006_v22, %v255_v39  ;;  %v804_v41 = vpop.f32.mrb[6].mxu0  ;;  %837 = vmatprep.mubr.msk.bf16.mxu1 %vm453_vm1, %v398_v37 }
  0xe8   :  { %v267_v42 = vadd.f32 %v804_v41, %v1006_v22  ;;  %v258_v43 = vpop.f32.mrb[7].mxu0  ;;  %838 = vmatmul.mubr.msk.bf16.vlgmr.msra.gmra.mrb[0].mxu1 %vm453_vm1, %v399_v35  ;;  %v372_v45 = vmax.f32 %v264_v38, 0.0 }
  0xe9   :  { %v259_v44 = vadd.f32 %v1006_v22, %v258_v43  ;;  %v370_v47 = vmax.f32 %v256_v40, 0.0 }
  0xea   :  { %v373_v46 = vmax.f32 %v267_v42, 0.0 }
  0xeb   :  { %v371_v48 = vmax.f32 %v259_v44, 0.0 }
  0xec   :  { %v401_v49 = vpack.c.bf16 %v373_v46, %v372_v45 }
  0xed   :  { %v400_v50 = vpack.c.bf16 %v371_v48, %v370_v47  ;;  %v807_v51 = vpop.f32.mrb[8].mxu0 }
  0xee   :  { %v280_v52 = vadd.f32 %v807_v51, %v1006_v22  ;;  %v271_v53 = vpop.f32.mrb[9].mxu0 }
  0xef   :  { %v272_v54 = vadd.f32 %v1006_v22, %v271_v53  ;;  %v808_v55 = vpop.f32.mrb[10].mxu0  ;;  %841 = vmatprep.mubr.msk.bf16.mxu1 %vm453_vm1, %v400_v50 }
  0xf0   :  { %v283_v56 = vadd.f32 %v808_v55, %v1006_v22  ;;  %v274_v57 = vpop.f32.mrb[11].mxu0  ;;  %842 = vmatmul.mubr.msk.bf16.gmra.mrb[4].mxu1 %vm453_vm1, %v401_v49  ;;  %v376_v59 = vmax.f32 %v280_v52, 0.0 }
  0xf1   :  { %v275_v58 = vadd.f32 %v1006_v22, %v274_v57  ;;  %v374_v61 = vmax.f32 %v272_v54, 0.0 }
  0xf2   :  { %v377_v60 = vmax.f32 %v283_v56, 0.0 }
  0xf3   :  { %v375_v62 = vmax.f32 %v275_v58, 0.0 }
  0xf4   :  { %v403_v63 = vpack.c.bf16 %v377_v60, %v376_v59 }
  0xf5   :  { %v402_v0 = vpack.c.bf16 %v375_v62, %v374_v61  ;;  %v811_v1 = vpop.f32.mrb[12].mxu0 }
  0xf6   :  { %v296_v2 = vadd.f32 %v811_v1, %v1006_v22  ;;  %v287_v3 = vpop.f32.mrb[13].mxu0 }
  0xf7   :  { %v288_v4 = vadd.f32 %v1006_v22, %v287_v3  ;;  %v812_v5 = vpop.f32.mrb[14].mxu0  ;;  %845 = vmatprep.mubr.msk.bf16.mxu1 %vm453_vm1, %v402_v0 }
  0xf8   :  { %v299_v6 = vadd.f32 %v812_v5, %v1006_v22  ;;  %v290_v7 = vpop.f32.mrb[15].mxu0  ;;  %846 = vmatmul.mubr.msk.bf16.gmra.mrb[8].mxu1 %vm453_vm1, %v403_v63  ;;  %v380_v9 = vmax.f32 %v296_v2, 0.0 }
  0xf9   :  { %v291_v8 = vadd.f32 %v1006_v22, %v290_v7  ;;  %v378_v11 = vmax.f32 %v288_v4, 0.0 }
  0xfa   :  { %v381_v10 = vmax.f32 %v299_v6, 0.0 }
  0xfb   :  { %v379_v12 = vmax.f32 %v291_v8, 0.0  ;;  %v1059_v8 = vld [vmem:[%s1193_s4] ss:$0 sm:$0xff] }
  0xfc   :  { %v405_v13 = vpack.c.bf16 %v381_v10, %v380_v9 }
  0xfd   :  { %v404_v14 = vpack.c.bf16 %v379_v12, %v378_v11  ;;  %v815_v15 = vpop.f32.mrb[16].mxu0 }
  0xfe   :  { %v312_v16 = vadd.f32 %v815_v15, %v1006_v22  ;;  %v303_v17 = vpop.f32.mrb[17].mxu0 }
  0xff   :  { %v304_v18 = vadd.f32 %v1006_v22, %v303_v17  ;;  %v816_v19 = vpop.f32.mrb[18].mxu0  ;;  %849 = vmatprep.mubr.msk.bf16.mxu1 %vm453_vm1, %v404_v14 }
 0x100   :  { %v315_v20 = vadd.f32 %v816_v19, %v1006_v22  ;;  %v306_v21 = vpop.f32.mrb[19].mxu0  ;;  %850 = vmatmul.mubr.msk.bf16.gmra.mrb[12].mxu1 %vm453_vm1, %v405_v13  ;;  %v384_v24 = vmax.f32 %v312_v16, 0.0 }
 0x101   :  { %v307_v23 = vadd.f32 %v1006_v22, %v306_v21  ;;  %v382_v26 = vmax.f32 %v304_v18, 0.0 }
 0x102   :  { %v385_v25 = vmax.f32 %v315_v20, 0.0 }
 0x103   :  { %v383_v27 = vmax.f32 %v307_v23, 0.0 }
 0x104   :  { %v407_v28 = vpack.c.bf16 %v385_v25, %v384_v24 }
 0x105   :  { %v406_v29 = vpack.c.bf16 %v383_v27, %v382_v26  ;;  %v819_v30 = vpop.f32.mrb[20].mxu0 }
 0x106   :  { %v328_v31 = vadd.f32 %v819_v30, %v1006_v22  ;;  %v319_v32 = vpop.f32.mrb[21].mxu0 }
 0x107   :  { %v320_v33 = vadd.f32 %v1006_v22, %v319_v32  ;;  %v820_v34 = vpop.f32.mrb[22].mxu0  ;;  %853 = vmatprep.mubr.msk.bf16.mxu1 %vm453_vm1, %v406_v29 }
 0x108   :  { %v331_v35 = vadd.f32 %v820_v34, %v1006_v22  ;;  %v322_v36 = vpop.f32.mrb[23].mxu0  ;;  %854 = vmatmul.mubr.msk.bf16.gmra.mrb[16].mxu1 %vm453_vm1, %v407_v28  ;;  %v388_v38 = vmax.f32 %v328_v31, 0.0 }
 0x109   :  { %v323_v37 = vadd.f32 %v1006_v22, %v322_v36  ;;  %v386_v40 = vmax.f32 %v320_v33, 0.0 }
 0x10a   :  { %v389_v39 = vmax.f32 %v331_v35, 0.0 }
 0x10b   :  { %v387_v41 = vmax.f32 %v323_v37, 0.0 }
 0x10c   :  { %v409_v42 = vpack.c.bf16 %v389_v39, %v388_v38 }
 0x10d   :  { %v408_v43 = vpack.c.bf16 %v387_v41, %v386_v40  ;;  %v823_v44 = vpop.f32.mrb[24].mxu0 }
 0x10e   :  { %v344_v45 = vadd.f32 %v823_v44, %v1006_v22  ;;  %v335_v46 = vpop.f32.mrb[25].mxu0 }
 0x10f   :  { %v336_v47 = vadd.f32 %v1006_v22, %v335_v46  ;;  %v824_v48 = vpop.f32.mrb[26].mxu0  ;;  %857 = vmatprep.mubr.msk.bf16.mxu1 %vm453_vm1, %v408_v43 }
 0x110   :  { %v347_v49 = vadd.f32 %v824_v48, %v1006_v22  ;;  %v338_v50 = vpop.f32.mrb[27].mxu0  ;;  %858 = vmatmul.mubr.msk.bf16.gmra.mrb[20].mxu1 %vm453_vm1, %v409_v42  ;;  %v392_v52 = vmax.f32 %v344_v45, 0.0 }
 0x111   :  { %v339_v51 = vadd.f32 %v1006_v22, %v338_v50  ;;  %v390_v54 = vmax.f32 %v336_v47, 0.0 }
 0x112   :  { %v393_v53 = vmax.f32 %v347_v49, 0.0 }
 0x113   :  { %v391_v55 = vmax.f32 %v339_v51, 0.0 }
 0x114   :  { %v411_v56 = vpack.c.bf16 %v393_v53, %v392_v52 }
 0x115   :  { %v410_v57 = vpack.c.bf16 %v391_v55, %v390_v54  ;;  %v827_v58 = vpop.f32.mrb[28].mxu0 }
 0x116   :  { %v360_v59 = vadd.f32 %v827_v58, %v1006_v22  ;;  %v351_v60 = vpop.f32.mrb[29].mxu0 }
 0x117   :  { %v352_v61 = vadd.f32 %v1006_v22, %v351_v60  ;;  %v828_v62 = vpop.f32.mrb[30].mxu0  ;;  %861 = vmatprep.mubr.msk.bf16.mxu1 %vm453_vm1, %v410_v57 }
 0x118   :  { %v363_v63 = vadd.f32 %v828_v62, %v1006_v22  ;;  %v354_v0 = vpop.f32.mrb[31].mxu0  ;;  %862 = vmatmul.mubr.msk.bf16.gmra.mrb[24].mxu1 %vm453_vm1, %v411_v56  ;;  %v396_v2 = vmax.f32 %v360_v59, 0.0 }
 0x119   :  { %v355_v1 = vadd.f32 %v1006_v22, %v354_v0  ;;  %v394_v4 = vmax.f32 %v352_v61, 0.0 }
 0x11a   :  { %v397_v3 = vmax.f32 %v363_v63, 0.0 }
 0x11b   :  { %v395_v5 = vmax.f32 %v355_v1, 0.0 }
 0x11c   :  { %v413_v6 = vpack.c.bf16 %v397_v3, %v396_v2 }
 0x11d   :  { %v412_v7 = vpack.c.bf16 %v395_v5, %v394_v4 }
 0x11f   :  { %865 = vmatprep.mubr.msk.bf16.mxu1 %vm453_vm1, %v412_v7 }
 0x120   :  { %866 = vmatmul.mubr.msk.bf16.gmra.mrb[28].mxu1 %vm453_vm1, %v413_v6 }
 0x1bb   :  { %v839_v9 = vpop.f32.mrb[0].mxu1 }
 0x1bc   :  { %v545_v10 = vadd.f32 %v839_v9, %v1059_v8  ;;  %v536_v11 = vpop.f32.mrb[1].mxu1 }
 0x1bd   :  { %v537_v22 = vadd.f32 %v1059_v8, %v536_v11  ;;  %v840_v12 = vpop.f32.mrb[2].mxu1 }
 0x1be   :  { %665 = vst [vmem:[%s1194_s5 + $0x10] sm:$0xff] %v545_v10  ;;  %v548_v13 = vadd.f32 %v840_v12, %v1059_v8  ;;  %v539_v14 = vpop.f32.mrb[3].mxu1 }
 0x1bf   :  { %663 = vst [vmem:[%s1194_s5] sm:$0xff] %v537_v22  ;;  %v540_v15 = vadd.f32 %v1059_v8, %v539_v14 }
 0x1c0   :  { %666 = vst [vmem:[%s1194_s5 + $0x18] sm:$0xff] %v548_v13 }
 0x1c1   :  { %664 = vst [vmem:[%s1194_s5 + $0x8] sm:$0xff] %v540_v15 }
 0x1c3   :  { %v843_v16 = vpop.f32.mrb[4].mxu1 }
 0x1c4   :  { %v561_v17 = vadd.f32 %v843_v16, %v1059_v8  ;;  %v552_v18 = vpop.f32.mrb[5].mxu1 }
 0x1c5   :  { %v553_v19 = vadd.f32 %v1059_v8, %v552_v18  ;;  %v844_v20 = vpop.f32.mrb[6].mxu1 }
 0x1c6   :  { %669 = vst [vmem:[%s1194_s5 + $0x30] sm:$0xff] %v561_v17  ;;  %v564_v21 = vadd.f32 %v844_v20, %v1059_v8  ;;  %v555_v23 = vpop.f32.mrb[7].mxu1 }
 0x1c7   :  { %667 = vst [vmem:[%s1194_s5 + $0x20] sm:$0xff] %v553_v19  ;;  %v556_v24 = vadd.f32 %v1059_v8, %v555_v23 }
 0x1c8   :  { %670 = vst [vmem:[%s1194_s5 + $0x38] sm:$0xff] %v564_v21 }
 0x1c9   :  { %668 = vst [vmem:[%s1194_s5 + $0x28] sm:$0xff] %v556_v24 }
 0x1cb   :  { %v847_v25 = vpop.f32.mrb[8].mxu1 }
 0x1cc   :  { %v577_v26 = vadd.f32 %v847_v25, %v1059_v8  ;;  %v568_v27 = vpop.f32.mrb[9].mxu1 }
 0x1cd   :  { %v569_v28 = vadd.f32 %v1059_v8, %v568_v27  ;;  %v848_v29 = vpop.f32.mrb[10].mxu1 }
 0x1ce   :  { %673 = vst [vmem:[%s1194_s5 + $0x50] sm:$0xff] %v577_v26  ;;  %v580_v30 = vadd.f32 %v848_v29, %v1059_v8  ;;  %v571_v31 = vpop.f32.mrb[11].mxu1 }
 0x1cf   :  { %671 = vst [vmem:[%s1194_s5 + $0x40] sm:$0xff] %v569_v28  ;;  %v572_v32 = vadd.f32 %v1059_v8, %v571_v31 }
 0x1d0   :  { %674 = vst [vmem:[%s1194_s5 + $0x58] sm:$0xff] %v580_v30 }
 0x1d1   :  { %672 = vst [vmem:[%s1194_s5 + $0x48] sm:$0xff] %v572_v32 }
 0x1d3   :  { %v851_v33 = vpop.f32.mrb[12].mxu1 }
 0x1d4   :  { %v593_v34 = vadd.f32 %v851_v33, %v1059_v8  ;;  %v584_v35 = vpop.f32.mrb[13].mxu1 }
 0x1d5   :  { %v585_v36 = vadd.f32 %v1059_v8, %v584_v35  ;;  %v852_v37 = vpop.f32.mrb[14].mxu1 }
 0x1d6   :  { %677 = vst [vmem:[%s1194_s5 + $0x70] sm:$0xff] %v593_v34  ;;  %v596_v38 = vadd.f32 %v852_v37, %v1059_v8  ;;  %v587_v39 = vpop.f32.mrb[15].mxu1 }
 0x1d7   :  { %675 = vst [vmem:[%s1194_s5 + $0x60] sm:$0xff] %v585_v36  ;;  %v588_v40 = vadd.f32 %v1059_v8, %v587_v39 }
 0x1d8   :  { %678 = vst [vmem:[%s1194_s5 + $0x78] sm:$0xff] %v596_v38 }
 0x1d9   :  { %676 = vst [vmem:[%s1194_s5 + $0x68] sm:$0xff] %v588_v40 }
 0x1db   :  { %v855_v41 = vpop.f32.mrb[16].mxu1 }
 0x1dc   :  { %v609_v42 = vadd.f32 %v855_v41, %v1059_v8  ;;  %v600_v43 = vpop.f32.mrb[17].mxu1 }
 0x1dd   :  { %v601_v44 = vadd.f32 %v1059_v8, %v600_v43  ;;  %v856_v45 = vpop.f32.mrb[18].mxu1 }
 0x1de   :  { %681 = vst [vmem:[%s1194_s5 + $0x90] sm:$0xff] %v609_v42  ;;  %v612_v46 = vadd.f32 %v856_v45, %v1059_v8  ;;  %v603_v47 = vpop.f32.mrb[19].mxu1 }
 0x1df   :  { %679 = vst [vmem:[%s1194_s5 + $0x80] sm:$0xff] %v601_v44  ;;  %v604_v48 = vadd.f32 %v1059_v8, %v603_v47 }
 0x1e0   :  { %682 = vst [vmem:[%s1194_s5 + $0x98] sm:$0xff] %v612_v46 }
 0x1e1   :  { %680 = vst [vmem:[%s1194_s5 + $0x88] sm:$0xff] %v604_v48 }
 0x1e3   :  { %v859_v49 = vpop.f32.mrb[20].mxu1 }
 0x1e4   :  { %v625_v50 = vadd.f32 %v859_v49, %v1059_v8  ;;  %v616_v51 = vpop.f32.mrb[21].mxu1 }
 0x1e5   :  { %v617_v52 = vadd.f32 %v1059_v8, %v616_v51  ;;  %v860_v53 = vpop.f32.mrb[22].mxu1 }
 0x1e6   :  { %685 = vst [vmem:[%s1194_s5 + $0xb0] sm:$0xff] %v625_v50  ;;  %v628_v54 = vadd.f32 %v860_v53, %v1059_v8  ;;  %v619_v55 = vpop.f32.mrb[23].mxu1 }
 0x1e7   :  { %683 = vst [vmem:[%s1194_s5 + $0xa0] sm:$0xff] %v617_v52  ;;  %v620_v56 = vadd.f32 %v1059_v8, %v619_v55 }
 0x1e8   :  { %686 = vst [vmem:[%s1194_s5 + $0xb8] sm:$0xff] %v628_v54 }
 0x1e9   :  { %684 = vst [vmem:[%s1194_s5 + $0xa8] sm:$0xff] %v620_v56 }
 0x1eb   :  { %v863_v57 = vpop.f32.mrb[24].mxu1 }
 0x1ec   :  { %v641_v58 = vadd.f32 %v863_v57, %v1059_v8  ;;  %v632_v59 = vpop.f32.mrb[25].mxu1 }
 0x1ed   :  { %v633_v60 = vadd.f32 %v1059_v8, %v632_v59  ;;  %v864_v61 = vpop.f32.mrb[26].mxu1 }
 0x1ee   :  { %689 = vst [vmem:[%s1194_s5 + $0xd0] sm:$0xff] %v641_v58  ;;  %v644_v62 = vadd.f32 %v864_v61, %v1059_v8  ;;  %v635_v63 = vpop.f32.mrb[27].mxu1 }
 0x1ef   :  { %687 = vst [vmem:[%s1194_s5 + $0xc0] sm:$0xff] %v633_v60  ;;  %v636_v0 = vadd.f32 %v1059_v8, %v635_v63 }
 0x1f0   :  { %690 = vst [vmem:[%s1194_s5 + $0xd8] sm:$0xff] %v644_v62 }
 0x1f1   :  { %688 = vst [vmem:[%s1194_s5 + $0xc8] sm:$0xff] %v636_v0 }
 0x1f3   :  { %v867_v1 = vpop.f32.mrb[28].mxu1 }
 0x1f4   :  { %v657_v2 = vadd.f32 %v867_v1, %v1059_v8  ;;  %v648_v3 = vpop.f32.mrb[29].mxu1 }
 0x1f5   :  { %v649_v4 = vadd.f32 %v1059_v8, %v648_v3  ;;  %v868_v5 = vpop.f32.mrb[30].mxu1 }
 0x1f6   :  { %693 = vst [vmem:[%s1194_s5 + $0xf0] sm:$0xff] %v657_v2  ;;  %v660_v6 = vadd.f32 %v868_v5, %v1059_v8  ;;  %v651_v7 = vpop.f32.mrb[31].mxu1 }
 0x1f7   :  { %691 = vst [vmem:[%s1194_s5 + $0xe0] sm:$0xff] %v649_v4  ;;  %v652_v9 = vadd.f32 %v1059_v8, %v651_v7 }
 0x1f8   :  { %694 = vst [vmem:[%s1194_s5 + $0xf8] sm:$0xff] %v660_v6 }
 0x1f9   :  { %692 = vst [vmem:[%s1194_s5 + $0xe8] sm:$0xff] %v652_v9 }

// kernel: _forward_impl.3
= control target key start
LH: loop header
LB: loop body
LE: loop exit
PB: predicated region body
PF: predicated region fallthrough
CT: control target
= control target key end

     0   :  { %vm72_vm0 = vcmask 392192   ;;  %s1458_s0 = inlined_call_operand.vmem [shape: bf16[32,48], index: 0, kind: input, shape index: {}]   ;;  %s1459_s1 = inlined_call_operand.vmem [shape: bf16[48,64], index: 1, kind: input, shape index: {}]   ;;  %s1460_s2 = inlined_call_operand.vmem [shape: f32[1,64], index: 2, kind: input, shape index: {}]   ;;  %s1461_s3 = inlined_call_operand.vmem [shape: bf16[64,640], index: 3, kind: input, shape index: {}]   ;;  %s1462_s4 = inlined_call_operand.vmem [shape: f32[1,640], index: 4, kind: input, shape index: {}]   ;;  %s1463_s5 = inlined_call_operand.vmem [shape: bf16[128,512], index: 5, kind: input, shape index: {}]   ;;  %s1464_s6 = inlined_call_operand.hbm [shape: f32[32,128], index: 6, kind: output, shape index: {0}]   ;;  %s1465_s7 = inlined_call_operand.vmem [shape: bf16[32,512], index: 7, kind: output, shape index: {1}]  }
   0x1   :  { %v1002_v0 = vld [vmem:[%s1459_s1] sm:$0xff]   ;;  %v1003_v1 = vld [vmem:[%s1459_s1 + $0x8] sm:$0xff]   ;;  %v1004_v3 = vld [vmem:[%s1459_s1 + $0x10] sm:$0xff]  }
   0x2   :  { %976 = vmatprep.subr.bf16.mxu0 %v1002_v0  ;;  %v1005_v2 = vld [vmem:[%s1458_s0] sm:$0xff]   ;;  %v1006_v8 = vld [vmem:[%s1458_s0 + $0x8] sm:$0xff]  }
   0x3   :  { %977 = vmatpush3.bf16.msra.mxu0 %v1002_v0  ;;  %982 = vmatprep.mubr.msk.bf16.mxu0 %vm72_vm0, %v1005_v2  ;;  %v1007_v4 = vld [vmem:[%s1461_s3 + $0x4] ss:$20 sps:$4 sm:$0xff]   ;;  %v1011_v5 = vld [vmem:[%s1461_s3 + $0xc] ss:$20 sps:$4 sm:$0xff]   ;;  %v1009_v9 = vld [vmem:[%s1461_s3 + $0x8] ss:$20 sps:$4 sm:$0xff]  }
   0x4   :  { %978 = vmatprep.subr.bf16.mxu0 %v1003_v1  ;;  %296 = vmatprep.subr.bf16.mxu1 %v1007_v4  ;;  %v1012_v6 = vld [vmem:[%s1461_s3] ss:$20 sps:$4 sm:$0xff]   ;;  %v1018_v11 = vld [vmem:[%s1461_s3 + $0x28] ss:$20 sps:$4 sm:$0xff]   ;;  %v1015_v12 = vld [vmem:[%s1461_s3 + $0x30] ss:$20 sps:$4 sm:$0xff]  }
   0x5   :  { %v1013_v7 = vld [vmem:[%s1461_s3 + $0x2c] ss:$20 sps:$4 sm:$0xff]   ;;  %297 = vmatpush1.bf16.msra.mxu1 %v1012_v6  ;;  %v1017_v10 = vld [vmem:[%s1461_s3 + $0x34] ss:$20 sps:$4 sm:$0xff]  }
   0x6   :  { %298 = vmatprep.subr.bf16.mxu1 %v1013_v7 }
   0x7   :  { %979 = vmatpush3.bf16.msra.mxu0 %v1003_v1 }
   0x8   :  { %980 = vmatprep.subr.bf16.mxu0 %v1004_v3 }
   0x9   :  { %299 = vmatpush1.bf16.msra.mxu1 %v1018_v11 }
   0xb   :  { %981 = vmatpush3.bf16.msra.mxu0 %v1004_v3 }
   0xc   :  { %349 = vmatprep.subr.bf16.mxu0 %v1011_v5 }
   0xe   :  { %983 = vmatmul.mubr.msk.bf16.vlgmr.msra.gmra.mrb[0].mxu0 %vm72_vm0, %v1006_v8 }
   0xf   :  { %350 = vmatpush1.bf16.msra.mxu0 %v1009_v9 }
  0x10   :  { %351 = vmatprep.subr.bf16.mxu0 %v1017_v10 }
  0x13   :  { %352 = vmatpush1.bf16.msra.mxu0 %v1015_v12 }
  0x14   :  { %13 = vsyncpa [#allocation3], 0  ;;  %v1019_v13 = vld [vmem:[%s1461_s3 + $0x54] ss:$20 sps:$4 sm:$0xff]   ;;  %v1023_v14 = vld [vmem:[%s1461_s3 + $0x5c] ss:$20 sps:$4 sm:$0xff]   ;;  %v160_v41 = vlaneseq }
  0x15   :  { %v1021_v15 = vld [vmem:[%s1461_s3 + $0x58] ss:$20 sps:$4 sm:$0xff]   ;;  %v1024_v16 = vld [vmem:[%s1461_s3 + $0x50] ss:$20 sps:$4 sm:$0xff]   ;;  %300 = vmatprep.subr.bf16.mxu1 %v1019_v13  ;;  %353 = vmatprep.subr.bf16.mxu0 %v1023_v14  ;;  %v1027_v19 = vld [vmem:[%s1461_s3 + $0x80] ss:$20 sps:$4 sm:$0xff]  }
  0x16   :  { %301 = vmatpush1.bf16.msra.mxu1 %v1024_v16  ;;  %v1025_v17 = vld [vmem:[%s1461_s3 + $0x7c] ss:$20 sps:$4 sm:$0xff]   ;;  %v1029_v18 = vld [vmem:[%s1461_s3 + $0x84] ss:$20 sps:$4 sm:$0xff]   ;;  %v1123_v22 = vmov 0   ;;  %vm289_vm1 = vcmask 523264  }
  0x17   :  { %354 = vmatpush1.bf16.msra.mxu0 %v1021_v15  ;;  %v1030_v20 = vld [vmem:[%s1461_s3 + $0x78] ss:$20 sps:$4 sm:$0xff]   ;;  %302 = vmatprep.subr.bf16.mxu1 %v1025_v17  ;;  %v1031_v21 = vld [vmem:[%s1461_s3 + $0x10] ss:$20 sps:$4 sm:$0xff]   ;;  %v883_v23 = vld [vmem:[%s1460_s2] ss:$0 sm:$0xff] }
  0x18   :  { %355 = vmatprep.subr.bf16.mxu0 %v1029_v18  ;;  %328 = vmatprep.mubr.bf16.mxu1 %v1123_v22  ;;  %v1032_v38 = vld [vmem:[%s1461_s3 + $0x38] ss:$20 sps:$4 sm:$0xff]   ;;  %v1033_v39 = vld [vmem:[%s1461_s3 + $0x60] ss:$20 sps:$4 sm:$0xff]   ;;  %v1034_v40 = vld [vmem:[%s1461_s3 + $0x88] ss:$20 sps:$4 sm:$0xff]  }
  0x19   :  { %381 = vmatprep.mubr.bf16.mxu0 %v1123_v22  ;;  %v1259_v42 = vshrl.u32 %v160_v41, 7  ;;  %v1265_v44 = vld [vmem:[%s1462_s4] sm:$0x1f]  ;;  %v1038_v8 = vld [vmem:[%s1463_s5 + $0x8] ss:$16 sps:$4 sm:$0xff]  }
  0x1a   :  { %303 = vmatpush1.bf16.msra.mxu1 %v1030_v20  ;;  %v1035_v6 = vld [vmem:[%s1463_s5] ss:$16 sps:$4 sm:$0xff]   ;;  %v1037_v7 = vld [vmem:[%s1463_s5 + $0x4] ss:$16 sps:$4 sm:$0xff]   ;;  %v1040_v9 = vld [vmem:[%s1463_s5 + $0xc] ss:$16 sps:$4 sm:$0xff]  }
  0x1b   :  { %356 = vmatpush1.bf16.msra.mxu0 %v1027_v19  ;;  %986 = vmatprep.subr.bf16.mxu1 %v1031_v21  ;;  %v162_v43 = vsub.s32 0, %v1259_v42  ;;  %v1043_v10 = vld [vmem:[%s1463_s5 + $0x24] ss:$16 sps:$4 sm:$0xff]   ;;  %v1046_v11 = vld [vmem:[%s1463_s5 + $0x2c] ss:$16 sps:$4 sm:$0xff]  }
  0x1c   :  { %685 = vmatprep.subr.bf16.mxu0 %v1037_v7  ;;  %v1041_v12 = vld [vmem:[%s1463_s5 + $0x20] ss:$16 sps:$4 sm:$0xff]   ;;  %v1044_v13 = vld [vmem:[%s1463_s5 + $0x28] ss:$16 sps:$4 sm:$0xff]   ;;  %v1049_v14 = vld [vmem:[%s1463_s5 + $0x44] ss:$16 sps:$4 sm:$0xff]  }
  0x1d   :  { %v163_v45 = vrot.slane %v1265_v44, %v162_v43  ;;  %v1052_v15 = vld [vmem:[%s1463_s5 + $0x4c] ss:$16 sps:$4 sm:$0xff]   ;;  %v1047_v16 = vld [vmem:[%s1463_s5 + $0x40] ss:$16 sps:$4 sm:$0xff]   ;;  %v1050_v17 = vld [vmem:[%s1463_s5 + $0x48] ss:$16 sps:$4 sm:$0xff]  }
  0x1e   :  { %v1055_v18 = vld [vmem:[%s1463_s5 + $0x64] ss:$16 sps:$4 sm:$0xff]   ;;  %v1058_v19 = vld [vmem:[%s1463_s5 + $0x6c] ss:$16 sps:$4 sm:$0xff]   ;;  %v1053_v20 = vld [vmem:[%s1463_s5 + $0x60] ss:$16 sps:$4 sm:$0xff]  }
  0x1f   :  { %v1059_v41 = vld [vmem:[%s1463_s5 + $0x80] ss:$16 sps:$4 sm:$0xff]   ;;  %v1062_v43 = vld [vmem:[%s1463_s5 + $0x88] ss:$16 sps:$4 sm:$0xff]  }
  0x20   :  { %v1077_v7 = vld [vmem:[%s1463_s5 + $0xe0] ss:$16 sps:$4 sm:$0xff]  }
  0xe1   :  { %v984_v24 = vpop.f32.mrb[0].mxu0 }
  0xe2   :  { %v122_v25 = vadd.f32 %v984_v24, %v883_v23  ;;  %v113_v26 = vpop.f32.mrb[1].mxu0 }
  0xe3   :  { %v114_v27 = vadd.f32 %v883_v23, %v113_v26  ;;  %v985_v28 = vpop.f32.mrb[2].mxu0 }
  0xe4   :  { %v125_v29 = vadd.f32 %v985_v28, %v883_v23  ;;  %v116_v30 = vpop.f32.mrb[3].mxu0  ;;  %v130_v32 = vmax.f32 %v122_v25, 0.0 }
  0xe5   :  { %v117_v31 = vadd.f32 %v883_v23, %v116_v30  ;;  %v128_v34 = vmax.f32 %v114_v27, 0.0 }
  0xe6   :  { %v131_v33 = vmax.f32 %v125_v29, 0.0 }
  0xe7   :  { %v129_v35 = vmax.f32 %v117_v31, 0.0 }
  0xe8   :  { %v133_v36 = vpack.c.bf16 %v131_v33, %v130_v32 }
  0xe9   :  { %v132_v37 = vpack.c.bf16 %v129_v35, %v128_v34 }
  0xeb   :  { %911 = vmatmul.mubr.msk.bf16.vlgmr.msra.gmra.mrb[0].mxu1 %vm289_vm1, %v132_v37  ;;  %913 = vmatmul.mubr.msk.bf16.vlgmr.msra.gmra.mrb[4].mxu0 %vm289_vm1, %v132_v37 }
  0xec   :  { %987 = vmatpush3.bf16.msra.mxu1 %v1031_v21  ;;  %338 = vmatprep.mubr.bf16.mxu1 %v1123_v22  ;;  %v1056_v21 = vld [vmem:[%s1463_s5 + $0x68] ss:$16 sps:$4 sm:$0xff]  }
  0xed   :  { %988 = vmatprep.subr.bf16.mxu1 %v1032_v38  ;;  %391 = vmatprep.mubr.bf16.mxu0 %v1123_v22 }
  0xee   :  { %686 = vmatpush1.bf16.msra.mxu0 %v1035_v6  ;;  %v1082_v6 = vld [vmem:[%s1463_s5 + $0xec] ss:$16 sps:$4 sm:$0xff]  }
  0xef   :  { %687 = vmatprep.subr.bf16.mxu0 %v1043_v10 }
  0xf0   :  { %989 = vmatpush3.bf16.msra.mxu1 %v1032_v38 }
  0xf1   :  { %990 = vmatprep.subr.bf16.mxu1 %v1033_v39 }
  0xf2   :  { %688 = vmatpush1.bf16.msra.mxu0 %v1041_v12 }
  0xf3   :  { %912 = vmatmul.mubr.msk.bf16.gmra.mrb[4].mxu1 %vm289_vm1, %v133_v36  ;;  %914 = vmatmul.mubr.msk.bf16.gmra.mrb[8].mxu0 %vm289_vm1, %v133_v36 }
  0xf4   :  { %991 = vmatpush3.bf16.msra.mxu1 %v1033_v39  ;;  %994 = vmatprep.mubr.msk.bf16.mxu1 %vm289_vm1, %v132_v37  ;;  %v1061_v39 = vld [vmem:[%s1463_s5 + $0x84] ss:$16 sps:$4 sm:$0xff]  }
  0xf5   :  { %992 = vmatprep.subr.bf16.mxu1 %v1034_v40  ;;  %717 = vmatprep.mubr.bf16.mxu0 %v1123_v22 }
  0xf6   :  { %689 = vmatprep.subr.bf16.mxu0 %v1049_v14 }
  0xf7   :  { %690 = vmatpush1.bf16.msra.mxu0 %v1047_v16 }
  0xf8   :  { %993 = vmatpush3.bf16.msra.mxu1 %v1034_v40  ;;  %691 = vmatprep.subr.bf16.mxu0 %v1055_v18  ;;  %v1064_v40 = vld [vmem:[%s1463_s5 + $0x8c] ss:$16 sps:$4 sm:$0xff]  }
  0xf9   :  { %738 = vmatprep.subr.bf16.mxu1 %v1040_v9 }
  0xfb   :  { %995 = vmatmul.mubr.msk.bf16.vlgmr.msra.gmra.mrb[8].mxu1 %vm289_vm1, %v133_v36  ;;  %692 = vmatpush1.bf16.msra.mxu0 %v1053_v20 }
  0xfc   :  { %770 = vmatprep.mubr.bf16.mxu1 %v1123_v22  ;;  %739 = vmatpush1.bf16.msra.mxu1 %v1038_v8  ;;  %v1080_v8 = vld [vmem:[%s1463_s5 + $0xe8] ss:$16 sps:$4 sm:$0xff]  }
  0xfd   :  { %740 = vmatprep.subr.bf16.mxu1 %v1046_v11  ;;  %693 = vmatprep.subr.bf16.mxu0 %v1061_v39 }
  0xff   :  { %694 = vmatpush1.bf16.msra.mxu0 %v1059_v41 }
 0x100   :  { %741 = vmatpush1.bf16.msra.mxu1 %v1044_v13 }
 0x101   :  { %742 = vmatprep.subr.bf16.mxu1 %v1052_v15 }
 0x104   :  { %743 = vmatpush1.bf16.msra.mxu1 %v1050_v17 }
 0x105   :  { %744 = vmatprep.subr.bf16.mxu1 %v1058_v19 }
 0x108   :  { %745 = vmatpush1.bf16.msra.mxu1 %v1056_v21 }
 0x109   :  { %746 = vmatprep.subr.bf16.mxu1 %v1064_v40 }
 0x10c   :  { %747 = vmatpush1.bf16.msra.mxu1 %v1062_v43 }
 0x1be   :  { %v330_v46 = vpop.f32.mrb[0].mxu1  ;;  %v1268_v47 = vpop.f32.mrb[4].mxu0 }
 0x1bf   :  { %v331_v48 = vadd.f32 %v330_v46, %v163_v45  ;;  %v1270_v49 = vpop.f32.mrb[1].mxu1  ;;  %v1272_v50 = vpop.f32.mrb[5].mxu0  ;;  %v1070_v46 = vld [vmem:[%s1463_s5 + $0xac] ss:$16 sps:$4 sm:$0xff]  }
 0x1c0   :  { %v334_v51 = vpop.f32.mrb[2].mxu1  ;;  %v1274_v52 = vpop.f32.mrb[6].mxu0  ;;  %748 = vmatprep.subr.bf16.mxu1 %v1070_v46 }
 0x1c1   :  { %v1276_v53 = vpop.f32.mrb[3].mxu1  ;;  %v1278_v54 = vpop.f32.mrb[7].mxu0  ;;  %451 = vmax.xlane.f32.xlu0 %v331_v48  ;;  %v335_v55 = vadd.f32 %v334_v51, %v163_v45  ;;  %v1068_v51 = vld [vmem:[%s1463_s5 + $0xa8] ss:$16 sps:$4 sm:$0xff]  }
 0x1c2   :  { %749 = vmatpush1.bf16.msra.mxu1 %v1068_v51 }
 0x1c5   :  { %453 = vmax.xlane.f32.xlu0 %v335_v55 }
 0x1c6   :  { %v340_v56 = vpop.f32.mrb[4].mxu1  ;;  %v1280_v57 = vpop.f32.mrb[8].mxu0 }
 0x1c7   :  { %v341_v58 = vadd.f32 %v340_v56, %v163_v45  ;;  %v1282_v59 = vpop.f32.mrb[5].mxu1  ;;  %v1284_v60 = vpop.f32.mrb[9].mxu0  ;;  %v1076_v56 = vld [vmem:[%s1463_s5 + $0xcc] ss:$16 sps:$4 sm:$0xff]  }
 0x1c8   :  { %v344_v61 = vpop.f32.mrb[6].mxu1  ;;  %v1286_v62 = vpop.f32.mrb[10].mxu0  ;;  %750 = vmatprep.subr.bf16.mxu1 %v1076_v56 }
 0x1c9   :  { %v1288_v63 = vpop.f32.mrb[7].mxu1  ;;  %v1290_v0 = vpop.f32.mrb[11].mxu0  ;;  %455 = vmax.xlane.f32.xlu1 %v341_v58  ;;  %v345_v1 = vadd.f32 %v344_v61, %v163_v45  ;;  %v1067_v45 = vld [vmem:[%s1463_s5 + $0xa4] ss:$16 sps:$4 sm:$0xff]   ;;  %v1074_v61 = vld [vmem:[%s1463_s5 + $0xc8] ss:$16 sps:$4 sm:$0xff]  }
 0x1ca   :  { %695 = vmatprep.subr.bf16.mxu0 %v1067_v45  ;;  %751 = vmatpush1.bf16.msra.mxu1 %v1074_v61 }
 0x1cb   :  { %752 = vmatprep.subr.bf16.mxu1 %v1082_v6 }
 0x1cd   :  { %457 = vmax.xlane.f32.xlu1 %v345_v1 }
 0x1ce   :  { %v1292_v2 = vpop.f32.mrb[8].mxu1  ;;  %753 = vmatpush1.bf16.msra.mxu1 %v1080_v8 }
 0x1cf   :  { %v1294_v3 = vpop.f32.mrb[9].mxu1 }
 0x1d0   :  { %v1296_v4 = vpop.f32.mrb[10].mxu1 }
 0x1d1   :  { %v1298_v5 = vpop.f32.mrb[11].mxu1 }
 0x24e   :  { %v452_v23 = vpop.xlane.xlu0 %451 }
 0x24f   :  { %v459_v24 = vsub.f32 %v331_v48, %v452_v23  ;;  %v1065_v48 = vld [vmem:[%s1463_s5 + $0xa0] ss:$16 sps:$4 sm:$0xff]  }
 0x250   :  { %696 = vmatpush1.bf16.msra.mxu0 %v1065_v48 }
 0x251   :  { %v463_v25 = vmul.f32 1.442695, %v459_v24 }
 0x252   :  { %v454_v26 = vpop.xlane.xlu0 %453 }
 0x253   :  { %1083 = vpow2.f32 %v463_v25  ;;  %v460_v27 = vsub.f32 %v335_v55, %v454_v26  ;;  %v1073_v55 = vld [vmem:[%s1463_s5 + $0xc4] ss:$16 sps:$4 sm:$0xff]  }
 0x254   :  { %697 = vmatprep.subr.bf16.mxu0 %v1073_v55 }
 0x255   :  { %v465_v28 = vmul.f32 1.442695, %v460_v27 }
 0x256   :  { %v456_v29 = vpop.xlane.xlu1 %455 }
 0x257   :  { %1085 = vpow2.f32 %v465_v28  ;;  %v461_v30 = vsub.f32 %v341_v58, %v456_v29  ;;  %v1071_v58 = vld [vmem:[%s1463_s5 + $0xc0] ss:$16 sps:$4 sm:$0xff]  }
 0x258   :  { %698 = vmatpush1.bf16.msra.mxu0 %v1071_v58 }
 0x259   :  { %v467_v31 = vmul.f32 1.442695, %v461_v30 }
 0x25a   :  { %v458_v32 = vpop.xlane.xlu1 %457 }
 0x25b   :  { %1087 = vpow2.f32 %v467_v31  ;;  %v462_v33 = vsub.f32 %v345_v1, %v458_v32  ;;  %v1079_v1 = vld [vmem:[%s1463_s5 + $0xe4] ss:$16 sps:$4 sm:$0xff]   ;;  %s1124_s5 = smov [#allocation2]  }
 0x25c   :  { %699 = vmatprep.subr.bf16.mxu0 %v1079_v1  ;;  %s868_s10 = sshll.u32 %s1124_s5, 4  ;;  %s869_s10 = int_to_ptr.vmem [resolvable:$true] %s868_s10 }
 0x25d   :  { %v1084_v34 = vpop.eup %1083  ;;  %v469_v35 = vmul.f32 1.442695, %v462_v33  ;;  %700 = vmatpush1.bf16.msra.mxu0 %v1077_v7  ;;  %s1099_s11 = scalar_lea.vmem %s869_s10, 512  ;;  %p1104_p1 = scmp.lt.s32.totalorder %s869_s10, %s869_s10 }
 0x25e   :  { %471 = vadd.xlane.f32.xlu0 %v1084_v34  ;;  %p1100_p0 = scmp.ne.s32.totalorder %s869_s10, %s1099_s11  ;;  %p1105_p2 = scmp.lt.s32.totalorder %s1099_s11, %s1099_s11 }
 0x25f   :  { %1089 = vpow2.f32 %v469_v35 }
 0x260   :  { %p1106_p3 = por %p1105_p2, %p1104_p1 }
 0x261   :  { %v1086_v36 = vpop.eup %1085 }
 0x262   :  { %473 = vadd.xlane.f32.xlu1 %v1086_v36  ;;  %p1107_p4 = pnand %p1106_p3, %p1100_p0 }
 0x265   :  { %v1088_v37 = vpop.eup %1087 }
 0x266   :  { %475 = vadd.xlane.f32.xlu0 %v1088_v37 }
 0x269   :  { %v1090_v38 = vpop.eup %1089 }
 0x26a   :  { %477 = vadd.xlane.f32.xlu1 %v1090_v38 }
 0x2eb   :  { %v472_v9 = vpop.xlane.xlu0 %471 }
 0x2ec   :  { %1091 = vrcp.f32 %v472_v9 }
 0x2ef   :  { %v474_v10 = vpop.xlane.xlu1 %473 }
 0x2f0   :  { %1093 = vrcp.f32 %v474_v10 }
 0x2f3   :  { %v476_v11 = vpop.xlane.xlu0 %475 }
 0x2f4   :  { %1095 = vrcp.f32 %v476_v11 }
 0x2f6   :  { %v1092_v12 = vpop.eup %1091 }
 0x2f7   :  { %v483_v13 = vmul.f32 %v1092_v12, %v1084_v34  ;;  %v478_v14 = vpop.xlane.xlu1 %477 }
 0x2f8   :  { %1097 = vrcp.f32 %v478_v14 }
 0x2f9   :  { %487 = vst [vmem:[#allocation2] sm:$0xff] %v483_v13 }
 0x2fa   :  { %v1094_v15 = vpop.eup %1093 }
 0x2fb   :  { %v484_v16 = vmul.f32 %v1094_v15, %v1086_v36 }
 0x2fd   :  { %488 = vst [vmem:[#allocation2 + $0x8] sm:$0xff] %v484_v16  ;;  %v491_v17 = vpack.c.bf16 %v484_v16, %v483_v13 }
 0x2fe   :  { %v1096_v18 = vpop.eup %1095 }
 0x2ff   :  { %718 = vmatmul.mubr.bf16.vlgmr.msra.gmra.mrb[12].mxu0 %v491_v17  ;;  %771 = vmatmul.mubr.bf16.vlgmr.msra.gmra.mrb[12].mxu1 %v491_v17  ;;  %v485_v19 = vmul.f32 %v1096_v18, %v1088_v37 }
 0x300   :  { %727 = vmatprep.mubr.bf16.mxu0 %v1123_v22  ;;  %780 = vmatprep.mubr.bf16.mxu1 %v1123_v22 }
 0x301   :  { %489 = vst [vmem:[#allocation2 + $0x10] sm:$0xff] %v485_v19 }
 0x302   :  { %v1098_v20 = vpop.eup %1097 }
 0x303   :  { %v486_v21 = vmul.f32 %v1098_v20, %v1090_v38 }
 0x305   :  { %490 = vst [vmem:[#allocation2 + $0x18] sm:$0xff] %v486_v21  ;;  %v492_v23 = vpack.c.bf16 %v486_v21, %v485_v19 }
 0x307   :  { %728 = vmatmul.mubr.bf16.gmra.mrb[16].mxu0 %v492_v23  ;;  %781 = vmatmul.mubr.bf16.gmra.mrb[16].mxu1 %v492_v23 }
 0x308   :  { %1110 = shalt.err (!%p1107_p4)
}
 0x309   :  { %s1111_s14 = scalar_lea.hbm %s1464_s6, 512 }
 0x30a   :  { %p1112_p5 = scmp.ne.s32.totalorder %s1464_s6, %s1111_s14  ;;  %p1115_p6 = scmp.lt.u32.totalorder %s1111_s14, %s1464_s6 }
 0x30c   :  { %p1117_p7 = pnand %p1115_p6, %p1112_p5 }
 0x30e   :  { %1120 = shalt.err (!%p1117_p7)
}
 0x30f   :  { %s1125_s18 = smov 128   ;;  %s1126_s19 = smov 8   ;;  %v166_v22 = vsub.s32 1, %v1259_v42  ;;  %v174_v24 = vsub.s32 3, %v1259_v42  ;;  %v170_v25 = vsub.s32 2, %v1259_v42  ;;  %v178_v26 = vsub.s32 4, %v1259_v42 }
 0x310   :  { %874 = dma.vmem_to_hbm [thread:$0]  %s869_s10, 512, %s1464_s6, [#allocation3], %s1125_s18, %s1125_s18, %s1126_s19  }
 0x311   :  { %v167_v27 = vrot.slane %v1265_v44, %v166_v22  ;;  %v175_v28 = vrot.slane %v1265_v44, %v174_v24  ;;  %v171_v29 = vrot.slane %v1265_v44, %v170_v25  ;;  %v179_v30 = vrot.slane %v1265_v44, %v178_v26 }
 0x313   :  { %v333_v31 = vadd.f32 %v1270_v49, %v167_v27  ;;  %v386_v32 = vadd.f32 %v1272_v50, %v175_v28  ;;  %v384_v33 = vadd.f32 %v1268_v47, %v171_v29  ;;  %v437_v34 = vadd.f32 %v1294_v3, %v179_v30 }
 0x314   :  { %v337_v42 = vadd.f32 %v1276_v53, %v167_v27  ;;  %v390_v37 = vadd.f32 %v1278_v54, %v175_v28  ;;  %v388_v44 = vadd.f32 %v1274_v52, %v171_v29  ;;  %v440_v49 = vadd.f32 %v1298_v5, %v179_v30 }
 0x315   :  { %v343_v58 = vadd.f32 %v1282_v59, %v167_v27  ;;  %v396_v61 = vadd.f32 %v1284_v60, %v175_v28  ;;  %v394_v1 = vadd.f32 %v1280_v57, %v171_v29  ;;  %v445_v6 = vadd.f32 %v1292_v2, %v179_v30 }
 0x316   :  { %v347_v9 = vadd.f32 %v1288_v63, %v167_v27  ;;  %v400_v59 = vadd.f32 %v1290_v0, %v175_v28  ;;  %v398_v2 = vadd.f32 %v1286_v62, %v171_v29  ;;  %v448_v12 = vadd.f32 %v1296_v4, %v179_v30 }
 0x3d2   :  { %v719_v35 = vpop.f32.mrb[12].mxu0  ;;  %v772_v36 = vpop.f32.mrb[12].mxu1 }
 0x3d3   :  { %v791_v38 = vmul.f32 %v719_v35, %v333_v31  ;;  %v793_v39 = vmul.f32 %v772_v36, %v386_v32  ;;  %v721_v40 = vpop.f32.mrb[13].mxu0  ;;  %v774_v41 = vpop.f32.mrb[13].mxu1 }
 0x3d4   :  { %v792_v43 = vmul.f32 %v721_v40, %v384_v33  ;;  %v794_v50 = vmul.f32 %v774_v41, %v437_v34  ;;  %v723_v45 = vpop.f32.mrb[14].mxu0  ;;  %v776_v47 = vpop.f32.mrb[14].mxu1 }
 0x3d5   :  { %v795_v46 = vmul.f32 %v723_v45, %v337_v42  ;;  %v797_v3 = vmul.f32 %v776_v47, %v390_v37  ;;  %v725_v48 = vpop.f32.mrb[15].mxu0  ;;  %v778_v51 = vpop.f32.mrb[15].mxu1 }
 0x3d6   :  { %v957_v55 = vpack.c.bf16 %v792_v43, %v791_v38  ;;  %v958_v53 = vpack.c.bf16 %v794_v50, %v793_v39  ;;  %v796_v56 = vmul.f32 %v725_v48, %v388_v44  ;;  %v798_v54 = vmul.f32 %v778_v51, %v440_v49 }
 0x3d8   :  { %855 = vst [vmem:[%s1465_s7] sm:$0xff] %v957_v55  ;;  %856 = vst [vmem:[%s1465_s7 + $0x8] sm:$0xff] %v958_v53  ;;  %v959_v52 = vpack.c.bf16 %v796_v56, %v795_v46  ;;  %v960_v5 = vpack.c.bf16 %v798_v54, %v797_v3 }
 0x3da   :  { %857 = vst [vmem:[%s1465_s7 + $0x10] sm:$0xff] %v959_v52  ;;  %858 = vst [vmem:[%s1465_s7 + $0x18] sm:$0xff] %v960_v5  ;;  %v729_v7 = vpop.f32.mrb[16].mxu0  ;;  %v782_v8 = vpop.f32.mrb[16].mxu1 }
 0x3db   :  { %v799_v10 = vmul.f32 %v729_v7, %v343_v58  ;;  %v801_v60 = vmul.f32 %v782_v8, %v396_v61  ;;  %v731_v11 = vpop.f32.mrb[17].mxu0  ;;  %v784_v57 = vpop.f32.mrb[17].mxu1 }
 0x3dc   :  { %v800_v13 = vmul.f32 %v731_v11, %v394_v1  ;;  %v802_v14 = vmul.f32 %v784_v57, %v445_v6  ;;  %v733_v15 = vpop.f32.mrb[18].mxu0  ;;  %v786_v16 = vpop.f32.mrb[18].mxu1 }
 0x3dd   :  { %v803_v17 = vmul.f32 %v733_v15, %v347_v9  ;;  %v805_v18 = vmul.f32 %v786_v16, %v400_v59  ;;  %v735_v19 = vpop.f32.mrb[19].mxu0  ;;  %v788_v20 = vpop.f32.mrb[19].mxu1 }
 0x3de   :  { %v961_v21 = vpack.c.bf16 %v800_v13, %v799_v10  ;;  %v962_v63 = vpack.c.bf16 %v802_v14, %v801_v60  ;;  %v804_v23 = vmul.f32 %v735_v19, %v398_v2  ;;  %v806_v0 = vmul.f32 %v788_v20, %v448_v12 }
 0x3e0   :  { %859 = vst [vmem:[%s1465_s7 + $0x20] sm:$0xff] %v961_v21  ;;  %860 = vst [vmem:[%s1465_s7 + $0x28] sm:$0xff] %v962_v63  ;;  %v963_v62 = vpack.c.bf16 %v804_v23, %v803_v17  ;;  %v964_v4 = vpack.c.bf16 %v806_v0, %v805_v18 }
 0x3e2   :  { %861 = vst [vmem:[%s1465_s7 + $0x30] sm:$0xff] %v963_v62  ;;  %862 = vst [vmem:[%s1465_s7 + $0x38] sm:$0xff] %v964_v4 }
 0x3e3   :  { %1121 = dma.done.wait [#allocation3], 512  }
 0x3e4   :  { %1122 = vsyncadd [#allocation3], 4294966784 }
 0x3e5   :  { %882 = vsyncpa [#allocation3], 1 }

// kernel: _forward_impl.4
= control target key start
LH: loop header
LB: loop body
LE: loop exit
PB: predicated region body
PF: predicated region fallthrough
CT: control target
= control target key end

     0   :  { %s1638_s9 = smov 0   ;;  %s1640_s10 = smov 0   ;;  %s1981_s0 = inlined_call_operand.vmem [shape: s32[1,1,512], index: 0, kind: input, shape index: {}]   ;;  %s1982_s1 = inlined_call_operand.vmem [shape: bf16[512,32], index: 1, kind: input, shape index: {}]   ;;  %s1983_s2 = inlined_call_operand.vmem [shape: bf16[256,32], index: 2, kind: output, shape index: {}]  }
   0x1   :  { %s1642_s11 = smov 0  }
   0x2 LB: > { %s27_s12 = sadd.s32 1, %s1615_s10  ;;  %p1213_p0 = scmp.ge.s32.totalorder %s1619_s11, 1  ;;  %s1619_s11 = sphi %s1642_s11, %s12_s11   ;;  %s1615_s10 = sphi %s1640_s10, %s1985_s10   ;;  %s1611_s9 = sphi %s1638_s9, %s1984_s9  }
   0x3   : > { %p29_p1 = scmp.ge.s32.totalorder %s27_s12, 2  ;;  %p156_p2 = scmp.lt.s32.totalorder %s1619_s11, 3 }
   0x5   : > { %s1987_s12 = smov (%p29_p1, %s27_s12), 0  ;;  %p157_p3 = pnand %p1213_p0, %p156_p2 }
   0x6   : > { %v1565_v0 = vld [vmem:[%s1982_s1 + $0x40] sm:$0xff] (!%p157_p3)   ;;  %v1569_v4 = vld [vmem:[%s1982_s1 + $0x48] sm:$0xff] (!%p157_p3)   ;;  %v1573_v8 = vld [vmem:[%s1982_s1 + $0x50] sm:$0xff] (!%p157_p3)   ;;  %v238_v16 = vlaneseq (!%p157_p3)  ;;  %s1216_s7 = sshll.u32 (!%p157_p3), %s1611_s9, 7  ;;  %v1621_v53 = vmov (!%p157_p3), 1.0|1.0  }
   0x7   : > { %160 = sbr.rel (%p157_p3) target bundleno = 330 (0x14a), region = 28  ;;  %v1566_v1 = vld [vmem:[%s1982_s1 + $0xc0] sm:$0xff] (!%p157_p3)   ;;  %1411 = vmatprep.subr.bf16.mxu0 (!%p157_p3), %v1565_v0  ;;  %v1570_v5 = vld [vmem:[%s1982_s1 + $0xc8] sm:$0xff] (!%p157_p3)   ;;  %v1574_v9 = vld [vmem:[%s1982_s1 + $0xd0] sm:$0xff] (!%p157_p3)   ;;  %v1753_v36 = vstv (!%p157_p3), %s1216_s7  ;;  %s1214_s4 = sshll.u32 (!%p157_p3), %s1611_s9, 4 }
   0x8   : > { %v1567_v2 = vld [vmem:[%s1982_s1] sm:$0xff] (!%p157_p3)   ;;  %1475 = vmatprep.subr.bf16.mxu1 (!%p157_p3), %v1566_v1  ;;  %v1571_v6 = vld [vmem:[%s1982_s1 + $0x8] sm:$0xff] (!%p157_p3)   ;;  %v1575_v10 = vld [vmem:[%s1982_s1 + $0x10] sm:$0xff] (!%p157_p3)   ;;  %v1718_v21 = vshrl.u32 (!%p157_p3), %v238_v16, 7  ;;  %p209_p4 = scmp.lt.s32.totalorder (!%p157_p3), %s1214_s4, 31 }
   0x9   : > { %v1568_v3 = vld [vmem:[%s1982_s1 + $0x80] sm:$0xff] (!%p157_p3)   ;;  %1412 = vmatpush3.bf16.msra.mxu0 (!%p157_p3), %v1567_v2  ;;  %v1572_v7 = vld [vmem:[%s1982_s1 + $0x88] sm:$0xff] (!%p157_p3)   ;;  %v1576_v11 = vld [vmem:[%s1982_s1 + $0x90] sm:$0xff] (!%p157_p3)  }
   0xa   : > { %1476 = vmatpush3.bf16.msra.mxu1 (!%p157_p3), %v1568_v3  ;;  %1413 = vmatprep.subr.bf16.mxu0 (!%p157_p3), %v1569_v4  ;;  %v1577_v12 = vld [vmem:[%s1982_s1 + $0x58] sm:$0xff] (!%p157_p3)   ;;  %v1581_v17 = vld [vmem:[%s1982_s1 + $0x60] sm:$0xff] (!%p157_p3)   ;;  %v1585_v22 = vld [vmem:[%s1982_s1 + $0x68] sm:$0xff] (!%p157_p3)   ;;  %v240_v26 = vadd.s32 (!%p157_p3), 8, %v1718_v21  ;;  %v280_v28 = vsub.s32 (!%p157_p3), 1, %v1718_v21  ;;  %v288_v30 = vsub.s32 (!%p157_p3), 3, %v1718_v21  ;;  %v257_v42 = vadd.s32 (!%p157_p3), %v1753_v36, %v1718_v21 }
   0xb   : > { %1477 = vmatprep.subr.bf16.mxu1 (!%p157_p3), %v1570_v5  ;;  %v1578_v13 = vld [vmem:[%s1982_s1 + $0xd8] sm:$0xff] (!%p157_p3)   ;;  %v1582_v18 = vld [vmem:[%s1982_s1 + $0xe0] sm:$0xff] (!%p157_p3)   ;;  %v1586_v23 = vld [vmem:[%s1982_s1 + $0xe8] sm:$0xff] (!%p157_p3)   ;;  %v276_v32 = vsub.s32 (!%p157_p3), 0, %v1718_v21  ;;  %v241_v34 = vadd.s32 (!%p157_p3), 16, %v1718_v21  ;;  %v242_v37 = vadd.s32 (!%p157_p3), 24, %v1718_v21 }
   0xc   : > { %v1579_v14 = vld [vmem:[%s1982_s1 + $0x18] sm:$0xff] (!%p157_p3)   ;;  %v1583_v19 = vld [vmem:[%s1982_s1 + $0x20] sm:$0xff] (!%p157_p3)   ;;  %v1587_v24 = vld [vmem:[%s1982_s1 + $0x28] sm:$0xff] (!%p157_p3)   ;;  %v284_v39 = vsub.s32 (!%p157_p3), 2, %v1718_v21  ;;  %v258_v43 = vadd.s32 (!%p157_p3), %v1753_v36, %v240_v26  ;;  %v243_v51 = vadd.s32 (!%p157_p3), 32, %v1718_v21  ;;  %v244_v52 = vadd.s32 (!%p157_p3), 40, %v1718_v21 }
   0xd   : > { %1414 = vmatpush3.bf16.msra.mxu0 (!%p157_p3), %v1571_v6  ;;  %v1580_v15 = vld [vmem:[%s1982_s1 + $0x98] sm:$0xff] (!%p157_p3)   ;;  %v1584_v20 = vld [vmem:[%s1982_s1 + $0xa0] sm:$0xff] (!%p157_p3)   ;;  %v1588_v25 = vld [vmem:[%s1982_s1 + $0xa8] sm:$0xff] (!%p157_p3)   ;;  %v259_v45 = vadd.s32 (!%p157_p3), %v1753_v36, %v241_v34  ;;  %v260_v46 = vadd.s32 (!%p157_p3), %v1753_v36, %v242_v37  ;;  %v245_v56 = vadd.s32 (!%p157_p3), 48, %v1718_v21  ;;  %v246_v57 = vadd.s32 (!%p157_p3), 56, %v1718_v21 }
   0xe   : > { %1478 = vmatpush3.bf16.msra.mxu1 %v1572_v7  ;;  %1415 = vmatprep.subr.bf16.mxu0 %v1573_v8  ;;  %v1589_v27 = vld [vmem:[%s1982_s1 + $0x70] sm:$0xff]   ;;  %v1593_v35 = vld [vmem:[%s1982_s1 + $0x78] sm:$0xff]   ;;  %v273_v44 = vld [vmem:[%s1981_s0] sm:$0xf]  ;;  %v261_v54 = vadd.s32 %v1753_v36, %v243_v51  ;;  %v262_v55 = vadd.s32 %v1753_v36, %v244_v52  ;;  %v247_v60 = vadd.s32 64, %v1718_v21  ;;  %v248_v61 = vadd.s32 72, %v1718_v21 }
   0xf   : > { %1479 = vmatprep.subr.bf16.mxu1 %v1574_v9  ;;  %v1590_v29 = vld [vmem:[%s1982_s1 + $0xf0] sm:$0xff]   ;;  %v1594_v38 = vld [vmem:[%s1982_s1 + $0xf8] sm:$0xff]   ;;  %v1774_v47 = vrot.slane %v273_v44, %v280_v28  ;;  %v1776_v48 = vrot.slane %v273_v44, %v288_v30  ;;  %v1778_v49 = vrot.slane %v273_v44, %v276_v32  ;;  %v1780_v50 = vrot.slane %v273_v44, %v284_v39  ;;  %s1989_s4 = smov (!%p209_p4, %s1214_s4), 31 }
  0x10   : > { %v1591_v31 = vld [vmem:[%s1982_s1 + $0x30] sm:$0xff]   ;;  %v1595_v40 = vld [vmem:[%s1982_s1 + $0x38] sm:$0xff]   ;;  %v263_v58 = vadd.s32 %v1753_v36, %v245_v56  ;;  %v264_v59 = vadd.s32 %v1753_v36, %v246_v57  ;;  %v265_v62 = vadd.s32 %v1753_v36, %v247_v60  ;;  %v266_v63 = vadd.s32 %v1753_v36, %v248_v61  ;;  %s1215_s9 = sshll.u32 %s1989_s4, 2 }
  0x11   : > { %1416 = vmatpush3.bf16.msra.mxu0 %v1575_v10  ;;  %v1592_v33 = vld [vmem:[%s1982_s1 + $0xb0] sm:$0xff]   ;;  %v1596_v41 = vld [vmem:[%s1982_s1 + $0xb8] sm:$0xff]   ;;  %vm291_vm0 = vcmp.eq.s32.totalorder %v257_v42, %v1774_v47  ;;  %vm295_vm1 = vcmp.eq.s32.totalorder %v258_v43, %v1774_v47  ;;  %vm293_vm2 = vcmp.eq.s32.totalorder %v257_v42, %v1776_v48  ;;  %vm297_vm3 = vcmp.eq.s32.totalorder %v258_v43, %v1776_v48  ;;  %s1924_s7 = scalar_lea.vmem %s1983_s2, %s1215_s9 }
  0x12   : > { %1480 = vmatpush3.bf16.msra.mxu1 %v1576_v11  ;;  %1417 = vmatprep.subr.bf16.mxu0 %v1577_v12  ;;  %vm1313_vm4 = vmpackc.low %vm295_vm1, %vm291_vm0  ;;  %vm290_vm5 = vcmp.eq.s32.totalorder %v257_v42, %v1778_v49  ;;  %vm294_vm6 = vcmp.eq.s32.totalorder %v258_v43, %v1778_v49  ;;  %vm292_vm7 = vcmp.eq.s32.totalorder %v257_v42, %v1780_v50  ;;  %v249_v0 = vadd.s32 80, %v1718_v21 }
  0x13   : > { %1481 = vmatprep.subr.bf16.mxu1 %v1578_v13  ;;  %vm296_vm8 = vcmp.eq.s32.totalorder %v258_v43, %v1780_v50  ;;  %1314 = vmatprep.mubr.msk.bf16.mxu0 %vm1313_vm4, %v1621_v53  ;;  %vm1345_vm9 = vmpackc.low %vm297_vm3, %vm293_vm2  ;;  %vm299_vm10 = vcmp.eq.s32.totalorder %v259_v45, %v1774_v47  ;;  %vm303_vm11 = vcmp.eq.s32.totalorder %v260_v46, %v1774_v47  ;;  %v250_v1 = vadd.s32 88, %v1718_v21 }
  0x14   : > { %1346 = vmatprep.mubr.msk.bf16.mxu1 %vm1345_vm9, %v1621_v53  ;;  %vm1315_vm12 = vmpackc.low %vm294_vm6, %vm290_vm5  ;;  %vm301_vm13 = vcmp.eq.s32.totalorder %v259_v45, %v1776_v48  ;;  %vm305_vm14 = vcmp.eq.s32.totalorder %v260_v46, %v1776_v48  ;;  %vm298_vm1 = vcmp.eq.s32.totalorder %v259_v45, %v1778_v49  ;;  %vm302_vm2 = vcmp.eq.s32.totalorder %v260_v46, %v1778_v49 }
  0x15   : > { %1418 = vmatpush3.bf16.msra.mxu0 %v1579_v14  ;;  %vm1347_vm15 = vmpackc.low %vm296_vm8, %vm292_vm7  ;;  %vm300_vm4 = vcmp.eq.s32.totalorder %v259_v45, %v1780_v50  ;;  %vm304_vm5 = vcmp.eq.s32.totalorder %v260_v46, %v1780_v50  ;;  %vm307_vm6 = vcmp.eq.s32.totalorder %v261_v54, %v1774_v47  ;;  %vm311_vm7 = vcmp.eq.s32.totalorder %v262_v55, %v1774_v47 }
  0x16   : > { %1482 = vmatpush3.bf16.msra.mxu1 %v1580_v15  ;;  %1419 = vmatprep.subr.bf16.mxu0 %v1581_v17  ;;  %vm1317_vm0 = vmpackc.low %vm303_vm11, %vm299_vm10  ;;  %vm309_vm9 = vcmp.eq.s32.totalorder %v261_v54, %v1776_v48  ;;  %vm313_vm10 = vcmp.eq.s32.totalorder %v262_v55, %v1776_v48  ;;  %v267_v2 = vadd.s32 %v1753_v36, %v249_v0  ;;  %v251_v4 = vadd.s32 96, %v1718_v21 }
  0x17   : > { %1483 = vmatprep.subr.bf16.mxu1 %v1582_v18  ;;  %vm1349_vm3 = vmpackc.low %vm305_vm14, %vm301_vm13  ;;  %vm306_vm14 = vcmp.eq.s32.totalorder %v261_v54, %v1778_v49  ;;  %v268_v3 = vadd.s32 %v1753_v36, %v250_v1  ;;  %v252_v5 = vadd.s32 104, %v1718_v21  ;;  %v253_v8 = vadd.s32 112, %v1718_v21 }
  0x18   : > { %vm1319_vm8 = vmpackc.low %vm302_vm2, %vm298_vm1  ;;  %vm312_vm1 = vcmp.eq.s32.totalorder %v262_v55, %v1780_v50  ;;  %vm315_vm2 = vcmp.eq.s32.totalorder %v263_v58, %v1774_v47  ;;  %v269_v6 = vadd.s32 %v1753_v36, %v251_v4  ;;  %v254_v9 = vadd.s32 120, %v1718_v21 }
  0x19   : > { %1420 = vmatpush3.bf16.msra.mxu0 %v1583_v19  ;;  %vm1351_vm11 = vmpackc.low %vm304_vm5, %vm300_vm4  ;;  %vm317_vm5 = vcmp.eq.s32.totalorder %v263_v58, %v1776_v48  ;;  %v270_v7 = vadd.s32 %v1753_v36, %v252_v5  ;;  %v271_v10 = vadd.s32 %v1753_v36, %v253_v8  ;;  %v1622_v12 = vmov 0.0  }
  0x1a   : > { %1484 = vmatpush3.bf16.msra.mxu1 %v1584_v20  ;;  %1421 = vmatprep.subr.bf16.mxu0 %v1585_v22  ;;  %vm1353_vm13 = vmpackc.low %vm313_vm10, %vm309_vm9  ;;  %vm314_vm10 = vcmp.eq.s32.totalorder %v263_v58, %v1778_v49  ;;  %v272_v11 = vadd.s32 %v1753_v36, %v254_v9 }
  0x1b   : > { %1485 = vmatprep.subr.bf16.mxu1 %v1586_v23 }
  0x1d   : > { %1422 = vmatpush3.bf16.msra.mxu0 %v1587_v24 }
  0x1e   : > { %1486 = vmatpush3.bf16.msra.mxu1 %v1588_v25  ;;  %1423 = vmatprep.subr.bf16.mxu0 %v1589_v27 }
  0x1f   : > { %1487 = vmatprep.subr.bf16.mxu1 %v1590_v29 }
  0x21   : > { %1424 = vmatpush3.bf16.msra.mxu0 %v1591_v31 }
  0x22   : > { %1488 = vmatpush3.bf16.msra.mxu1 %v1592_v33  ;;  %1425 = vmatprep.subr.bf16.mxu0 %v1593_v35 }
  0x23   : > { %1489 = vmatprep.subr.bf16.mxu1 %v1594_v38 }
  0x25   : > { %1426 = vmatpush3.bf16.msra.mxu0 %v1595_v40 }
  0x26   : > { %1490 = vmatpush3.bf16.msra.mxu1 %v1596_v41 }
  0x28   : > { %1316 = vmatmul.mubr.msk.bf16.vlgmr.msra.gmra.mrb[0].mxu0 %vm1315_vm12, %v1621_v53  ;;  %vm1321_vm12 = vmpackc.low %vm311_vm7, %vm307_vm6  ;;  %vm321_vm6 = vcmp.eq.s32.totalorder %v264_v59, %v1776_v48 }
  0x29   : > { %1348 = vmatmul.mubr.msk.bf16.vlgmr.msra.gmra.mrb[0].mxu1 %vm1347_vm15, %v1621_v53  ;;  %1318 = vmatprep.mubr.msk.bf16.mxu0 %vm1317_vm0, %v1621_v53  ;;  %vm310_vm15 = vcmp.eq.s32.totalorder %v262_v55, %v1778_v49  ;;  %vm308_vm0 = vcmp.eq.s32.totalorder %v261_v54, %v1780_v50  ;;  %vm1357_vm9 = vmpackc.low %vm321_vm6, %vm317_vm5  ;;  %vm322_vm6 = vcmp.eq.s32.totalorder %v265_v62, %v1778_v49 }
  0x2a   : > { %1350 = vmatprep.mubr.msk.bf16.mxu1 %vm1349_vm3, %v1621_v53  ;;  %vm319_vm3 = vcmp.eq.s32.totalorder %v264_v59, %v1774_v47  ;;  %vm1323_vm4 = vmpackc.low %vm310_vm15, %vm306_vm14  ;;  %vm323_vm14 = vcmp.eq.s32.totalorder %v265_v62, %v1774_v47  ;;  %vm327_vm15 = vcmp.eq.s32.totalorder %v266_v63, %v1774_v47 }
  0x2b   : > { %vm1355_vm7 = vmpackc.low %vm312_vm1, %vm308_vm0  ;;  %vm325_vm1 = vcmp.eq.s32.totalorder %v265_v62, %v1776_v48 }
  0x30   : > { %1320 = vmatmul.mubr.msk.bf16.gmra.mrb[4].mxu0 %vm1319_vm8, %v1621_v53  ;;  %vm1325_vm8 = vmpackc.low %vm319_vm3, %vm315_vm2  ;;  %vm329_vm2 = vcmp.eq.s32.totalorder %v266_v63, %v1776_v48 }
  0x31   : > { %1352 = vmatmul.mubr.msk.bf16.gmra.mrb[4].mxu1 %vm1351_vm11, %v1621_v53  ;;  %1322 = vmatprep.mubr.msk.bf16.mxu0 %vm1321_vm12, %v1621_v53  ;;  %vm318_vm11 = vcmp.eq.s32.totalorder %v264_v59, %v1778_v49  ;;  %vm316_vm12 = vcmp.eq.s32.totalorder %v263_v58, %v1780_v50  ;;  %vm1361_vm5 = vmpackc.low %vm329_vm2, %vm325_vm1  ;;  %vm330_vm2 = vcmp.eq.s32.totalorder %v267_v2, %v1778_v49 }
  0x32   : > { %1354 = vmatprep.mubr.msk.bf16.mxu1 %vm1353_vm13, %v1621_v53  ;;  %vm320_vm13 = vcmp.eq.s32.totalorder %v264_v59, %v1780_v50  ;;  %vm1327_vm0 = vmpackc.low %vm318_vm11, %vm314_vm10  ;;  %vm331_vm10 = vcmp.eq.s32.totalorder %v267_v2, %v1774_v47  ;;  %vm335_vm11 = vcmp.eq.s32.totalorder %v268_v3, %v1774_v47 }
  0x33   : > { %vm1359_vm3 = vmpackc.low %vm320_vm13, %vm316_vm12  ;;  %vm333_vm13 = vcmp.eq.s32.totalorder %v267_v2, %v1776_v48 }
  0x38   : > { %1324 = vmatmul.mubr.msk.bf16.gmra.mrb[8].mxu0 %vm1323_vm4, %v1621_v53  ;;  %vm1329_vm4 = vmpackc.low %vm327_vm15, %vm323_vm14  ;;  %vm337_vm14 = vcmp.eq.s32.totalorder %v268_v3, %v1776_v48 }
  0x39   : > { %1356 = vmatmul.mubr.msk.bf16.gmra.mrb[8].mxu1 %vm1355_vm7, %v1621_v53  ;;  %1326 = vmatprep.mubr.msk.bf16.mxu0 %vm1325_vm8, %v1621_v53  ;;  %vm326_vm7 = vcmp.eq.s32.totalorder %v266_v63, %v1778_v49  ;;  %vm324_vm8 = vcmp.eq.s32.totalorder %v265_v62, %v1780_v50  ;;  %vm1365_vm1 = vmpackc.low %vm337_vm14, %vm333_vm13  ;;  %vm338_vm14 = vcmp.eq.s32.totalorder %v269_v6, %v1778_v49 }
  0x3a   : > { %1358 = vmatprep.mubr.msk.bf16.mxu1 %vm1357_vm9, %v1621_v53  ;;  %vm328_vm9 = vcmp.eq.s32.totalorder %v266_v63, %v1780_v50  ;;  %vm1331_vm12 = vmpackc.low %vm326_vm7, %vm322_vm6  ;;  %vm339_vm6 = vcmp.eq.s32.totalorder %v269_v6, %v1774_v47  ;;  %vm343_vm7 = vcmp.eq.s32.totalorder %v270_v7, %v1774_v47 }
  0x3b   : > { %vm1363_vm15 = vmpackc.low %vm328_vm9, %vm324_vm8  ;;  %vm341_vm9 = vcmp.eq.s32.totalorder %v269_v6, %v1776_v48 }
  0x40   : > { %1328 = vmatmul.mubr.msk.bf16.gmra.mrb[12].mxu0 %vm1327_vm0, %v1621_v53  ;;  %vm1333_vm0 = vmpackc.low %vm335_vm11, %vm331_vm10  ;;  %vm345_vm10 = vcmp.eq.s32.totalorder %v270_v7, %v1776_v48 }
  0x41   : > { %1360 = vmatmul.mubr.msk.bf16.gmra.mrb[12].mxu1 %vm1359_vm3, %v1621_v53  ;;  %1330 = vmatprep.mubr.msk.bf16.mxu0 %vm1329_vm4, %v1621_v53  ;;  %vm334_vm3 = vcmp.eq.s32.totalorder %v268_v3, %v1778_v49  ;;  %vm332_vm4 = vcmp.eq.s32.totalorder %v267_v2, %v1780_v50  ;;  %vm1369_vm13 = vmpackc.low %vm345_vm10, %vm341_vm9  ;;  %vm346_vm10 = vcmp.eq.s32.totalorder %v271_v10, %v1778_v49 }
  0x42   : > { %1362 = vmatprep.mubr.msk.bf16.mxu1 %vm1361_vm5, %v1621_v53  ;;  %vm336_vm5 = vcmp.eq.s32.totalorder %v268_v3, %v1780_v50  ;;  %vm1335_vm8 = vmpackc.low %vm334_vm3, %vm330_vm2  ;;  %vm347_vm2 = vcmp.eq.s32.totalorder %v271_v10, %v1774_v47  ;;  %vm351_vm3 = vcmp.eq.s32.totalorder %v272_v11, %v1774_v47 }
  0x43   : > { %vm1367_vm11 = vmpackc.low %vm336_vm5, %vm332_vm4  ;;  %vm349_vm5 = vcmp.eq.s32.totalorder %v271_v10, %v1776_v48 }
  0x48   : > { %1332 = vmatmul.mubr.msk.bf16.gmra.mrb[16].mxu0 %vm1331_vm12, %v1621_v53  ;;  %vm1337_vm12 = vmpackc.low %vm343_vm7, %vm339_vm6  ;;  %vm353_vm6 = vcmp.eq.s32.totalorder %v272_v11, %v1776_v48 }
  0x49   : > { %1364 = vmatmul.mubr.msk.bf16.gmra.mrb[16].mxu1 %vm1363_vm15, %v1621_v53  ;;  %1334 = vmatprep.mubr.msk.bf16.mxu0 %vm1333_vm0, %v1621_v53  ;;  %vm342_vm15 = vcmp.eq.s32.totalorder %v270_v7, %v1778_v49  ;;  %vm340_vm0 = vcmp.eq.s32.totalorder %v269_v6, %v1780_v50  ;;  %vm1373_vm9 = vmpackc.low %vm353_vm6, %vm349_vm5 }
  0x4a   : > { %1366 = vmatprep.mubr.msk.bf16.mxu1 %vm1365_vm1, %v1621_v53  ;;  %vm344_vm1 = vcmp.eq.s32.totalorder %v270_v7, %v1780_v50  ;;  %vm1339_vm4 = vmpackc.low %vm342_vm15, %vm338_vm14 }
  0x4b   : > { %vm1371_vm7 = vmpackc.low %vm344_vm1, %vm340_vm0  ;;  %vm221_vm0 = vcmask 261120   ;;  %vm1096_vm1 = vcmask 257024  }
  0x4c   : > { %222 = vst.msk [vmem:[#allocation2] sm:$0xff] %vm221_vm0, %v1622_v12  ;;  %223 = vst.msk [vmem:[#allocation2 + $0x8] sm:$0xff] %vm221_vm0, %v1622_v12 }
  0x4d   : > { %224 = vst.msk [vmem:[#allocation2 + $0x10] sm:$0xff] %vm221_vm0, %v1622_v12  ;;  %225 = vst.msk [vmem:[#allocation2 + $0x18] sm:$0xff] %vm221_vm0, %v1622_v12 }
  0x4e   : > { %226 = vst.msk [vmem:[#allocation2 + $0x20] sm:$0xff] %vm221_vm0, %v1622_v12  ;;  %227 = vst.msk [vmem:[#allocation2 + $0x28] sm:$0xff] %vm221_vm0, %v1622_v12 }
  0x4f   : > { %228 = vst.msk [vmem:[#allocation2 + $0x30] sm:$0xff] %vm221_vm0, %v1622_v12  ;;  %229 = vst.msk [vmem:[#allocation2 + $0x38] sm:$0xff] %vm221_vm0, %v1622_v12 }
  0x50   : > { %1336 = vmatmul.mubr.msk.bf16.gmra.mrb[20].mxu0 %vm1335_vm8, %v1621_v53  ;;  %vm1341_vm8 = vmpackc.low %vm351_vm3, %vm347_vm2  ;;  %230 = vst.msk [vmem:[#allocation2 + $0x40] sm:$0xff] %vm221_vm0, %v1622_v12 }
  0x51   : > { %1368 = vmatmul.mubr.msk.bf16.gmra.mrb[20].mxu1 %vm1367_vm11, %v1621_v53  ;;  %1338 = vmatprep.mubr.msk.bf16.mxu0 %vm1337_vm12, %v1621_v53  ;;  %vm350_vm11 = vcmp.eq.s32.totalorder %v272_v11, %v1778_v49  ;;  %vm348_vm12 = vcmp.eq.s32.totalorder %v271_v10, %v1780_v50  ;;  %231 = vst.msk [vmem:[#allocation2 + $0x48] sm:$0xff] %vm221_vm0, %v1622_v12  ;;  %232 = vst.msk [vmem:[#allocation2 + $0x50] sm:$0xff] %vm221_vm0, %v1622_v12 }
  0x52   : > { %1370 = vmatprep.mubr.msk.bf16.mxu1 %vm1369_vm13, %v1621_v53  ;;  %vm352_vm13 = vcmp.eq.s32.totalorder %v272_v11, %v1780_v50  ;;  %vm1343_vm14 = vmpackc.low %vm350_vm11, %vm346_vm10  ;;  %233 = vst.msk [vmem:[#allocation2 + $0x58] sm:$0xff] %vm221_vm0, %v1622_v12 }
  0x53   : > { %vm1375_vm15 = vmpackc.low %vm352_vm13, %vm348_vm12  ;;  %234 = vst.msk [vmem:[#allocation2 + $0x60] sm:$0xff] %vm221_vm0, %v1622_v12  ;;  %v514_v22 = vld [vmem:[#allocation2] sm:$0xff]  ;;  %v515_v27 = vld [vmem:[#allocation2 + $0x8] sm:$0xff] }
  0x54   : > { %235 = vst.msk [vmem:[#allocation2 + $0x68] sm:$0xff] %vm221_vm0, %v1622_v12  ;;  %236 = vst.msk [vmem:[#allocation2 + $0x70] sm:$0xff] %vm221_vm0, %v1622_v12  ;;  %v516_v40 = vld [vmem:[#allocation2 + $0x10] sm:$0xff]  ;;  %v517_v45 = vld [vmem:[#allocation2 + $0x18] sm:$0xff] }
  0x55   : > { %237 = vst.msk [vmem:[#allocation2 + $0x78] sm:$0xff] %vm221_vm0, %v1622_v12  ;;  %v518_v62 = vld [vmem:[#allocation2 + $0x20] sm:$0xff]  ;;  %v519_v3 = vld [vmem:[#allocation2 + $0x28] sm:$0xff] }
  0x58   : > { %1340 = vmatmul.mubr.msk.bf16.gmra.mrb[24].mxu0 %vm1339_vm4, %v1621_v53 }
  0x59   : > { %1372 = vmatmul.mubr.msk.bf16.gmra.mrb[24].mxu1 %vm1371_vm7, %v1621_v53  ;;  %1342 = vmatprep.mubr.msk.bf16.mxu0 %vm1341_vm8, %v1621_v53 }
  0x5a   : > { %1374 = vmatprep.mubr.msk.bf16.mxu1 %vm1373_vm9, %v1621_v53 }
  0x60   : > { %1344 = vmatmul.mubr.msk.bf16.gmra.mrb[28].mxu0 %vm1343_vm14, %v1621_v53 }
  0x61   : > { %1376 = vmatmul.mubr.msk.bf16.gmra.mrb[28].mxu1 %vm1375_vm15, %v1621_v53 }
  0xfb   : > { %v1427_v13 = vpop.f32.mrb[0].mxu0 }
  0xfc   : > { %v1491_v14 = vpop.f32.mrb[0].mxu1  ;;  %v1428_v15 = vpop.f32.mrb[1].mxu0 }
  0xfd   : > { %v1429_v16 = vadd.f32 %v1428_v15, %v1427_v13  ;;  %v1492_v17 = vpop.f32.mrb[1].mxu1  ;;  %v1430_v18 = vpop.f32.mrb[2].mxu0 }
  0xfe   : > { %v1493_v19 = vadd.f32 %v1492_v17, %v1491_v14  ;;  %v1494_v20 = vpop.f32.mrb[2].mxu1  ;;  %v1431_v21 = vpop.f32.mrb[3].mxu0 }
  0xff   : > { %v1432_v23 = vadd.f32 %v1431_v21, %v1430_v18  ;;  %v1495_v24 = vpop.f32.mrb[3].mxu1 }
 0x100   : > { %v918_v25 = vadd.f32 %v1493_v19, %v1429_v16  ;;  %v1496_v26 = vadd.f32 %v1495_v24, %v1494_v20  ;;  %v520_v20 = vld [vmem:[#allocation2 + $0x30] sm:$0xff] }
 0x102   : > { %v980_v28 = vadd.f32 %v918_v25, %v514_v22  ;;  %v921_v29 = vadd.f32 %v1496_v26, %v1432_v23  ;;  %v521_v25 = vld [vmem:[#allocation2 + $0x38] sm:$0xff] }
 0x103   : > { %v1433_v30 = vpop.f32.mrb[4].mxu0 }
 0x104   : > { %997 = vst.msk [vmem:[#allocation2] sm:$0xff] %vm221_vm0, %v980_v28  ;;  %v981_v31 = vadd.f32 %v921_v29, %v515_v27  ;;  %v1497_v32 = vpop.f32.mrb[4].mxu1  ;;  %v1434_v33 = vpop.f32.mrb[5].mxu0 }
 0x105   : > { %v1435_v34 = vadd.f32 %v1434_v33, %v1433_v30  ;;  %v1498_v35 = vpop.f32.mrb[5].mxu1  ;;  %v1436_v36 = vpop.f32.mrb[6].mxu0 }
 0x106   : > { %998 = vst.msk [vmem:[#allocation2 + $0x8] sm:$0xff] %vm221_vm0, %v981_v31  ;;  %v1499_v37 = vadd.f32 %v1498_v35, %v1497_v32  ;;  %v1500_v38 = vpop.f32.mrb[6].mxu1  ;;  %v1437_v39 = vpop.f32.mrb[7].mxu0 }
 0x107   : > { %v1438_v41 = vadd.f32 %v1437_v39, %v1436_v36  ;;  %v1501_v42 = vpop.f32.mrb[7].mxu1 }
 0x108   : > { %v926_v43 = vadd.f32 %v1499_v37, %v1435_v34  ;;  %v1502_v44 = vadd.f32 %v1501_v42, %v1500_v38  ;;  %v522_v42 = vld [vmem:[#allocation2 + $0x40] sm:$0xff] }
 0x10a   : > { %v982_v46 = vadd.f32 %v926_v43, %v516_v40  ;;  %v929_v47 = vadd.f32 %v1502_v44, %v1438_v41 }
 0x10b   : > { %v1016_v48 = vld [vmem:[#allocation2] sm:$0xff]  ;;  %v1439_v49 = vpop.f32.mrb[8].mxu0 }
 0x10c   : > { %v1395_v50 = vpack.c.bf16 %v1016_v48, %v1016_v48  ;;  %999 = vst.msk [vmem:[#allocation2 + $0x10] sm:$0xff] %vm221_vm0, %v982_v46  ;;  %v983_v51 = vadd.f32 %v929_v47, %v517_v45  ;;  %v1503_v52 = vpop.f32.mrb[8].mxu1  ;;  %v1440_v53 = vpop.f32.mrb[9].mxu0  ;;  %v523_v47 = vld [vmem:[#allocation2 + $0x48] sm:$0xff] }
 0x10d   : > { %v1017_v54 = vld [vmem:[#allocation2 + $0x8] sm:$0xff]  ;;  %v1441_v55 = vadd.f32 %v1440_v53, %v1439_v49  ;;  %v1504_v56 = vpop.f32.mrb[9].mxu1  ;;  %v1442_v57 = vpop.f32.mrb[10].mxu0 }
 0x10e   : > { %1097 = vst.msk [vmem:[%s1924_s7] sm:$0xf] %vm1096_vm1, %v1395_v50  ;;  %v1396_v58 = vpack.c.bf16 %v1017_v54, %v1017_v54  ;;  %v1505_v59 = vadd.f32 %v1504_v56, %v1503_v52  ;;  %v1506_v60 = vpop.f32.mrb[10].mxu1  ;;  %v1443_v61 = vpop.f32.mrb[11].mxu0 }
 0x10f   : > { %1000 = vst.msk [vmem:[#allocation2 + $0x18] sm:$0xff] %vm221_vm0, %v983_v51  ;;  %v1444_v63 = vadd.f32 %v1443_v61, %v1442_v57  ;;  %v1507_v0 = vpop.f32.mrb[11].mxu1 }
 0x110   : > { %1098 = vst.msk [vmem:[%s1924_s7 + $0x4] sm:$0xf] %vm1096_vm1, %v1396_v58  ;;  %v934_v1 = vadd.f32 %v1505_v59, %v1441_v55  ;;  %v1508_v2 = vadd.f32 %v1507_v0, %v1506_v60  ;;  %v524_v0 = vld [vmem:[#allocation2 + $0x50] sm:$0xff] }
 0x112   : > { %v984_v4 = vadd.f32 %v934_v1, %v518_v62  ;;  %v937_v5 = vadd.f32 %v1508_v2, %v1444_v63 }
 0x113   : > { %v1018_v6 = vld [vmem:[#allocation2 + $0x10] sm:$0xff]  ;;  %v1445_v7 = vpop.f32.mrb[12].mxu0 }
 0x114   : > { %v1397_v8 = vpack.c.bf16 %v1018_v6, %v1018_v6  ;;  %1001 = vst.msk [vmem:[#allocation2 + $0x20] sm:$0xff] %vm221_vm0, %v984_v4  ;;  %v985_v9 = vadd.f32 %v937_v5, %v519_v3  ;;  %v1509_v10 = vpop.f32.mrb[12].mxu1  ;;  %v1446_v11 = vpop.f32.mrb[13].mxu0  ;;  %v525_v5 = vld [vmem:[#allocation2 + $0x58] sm:$0xff] }
 0x115   : > { %v1447_v13 = vadd.f32 %v1446_v11, %v1445_v7  ;;  %v1510_v14 = vpop.f32.mrb[13].mxu1  ;;  %v1448_v15 = vpop.f32.mrb[14].mxu0 }
 0x116   : > { %v1019_v12 = vld [vmem:[#allocation2 + $0x18] sm:$0xff]  ;;  %1099 = vst.msk [vmem:[%s1924_s7 + $0x8] sm:$0xf] %vm1096_vm1, %v1397_v8  ;;  %v1511_v17 = vadd.f32 %v1510_v14, %v1509_v10  ;;  %v1512_v18 = vpop.f32.mrb[14].mxu1  ;;  %v1449_v19 = vpop.f32.mrb[15].mxu0 }
 0x117   : > { %v1398_v16 = vpack.c.bf16 %v1019_v12, %v1019_v12  ;;  %1002 = vst.msk [vmem:[#allocation2 + $0x28] sm:$0xff] %vm221_vm0, %v985_v9  ;;  %v1450_v21 = vadd.f32 %v1449_v19, %v1448_v15  ;;  %v1513_v22 = vpop.f32.mrb[15].mxu1 }
 0x118   : > { %v942_v23 = vadd.f32 %v1511_v17, %v1447_v13  ;;  %v1514_v24 = vadd.f32 %v1513_v22, %v1512_v18  ;;  %v526_v22 = vld [vmem:[#allocation2 + $0x60] sm:$0xff] }
 0x119   : > { %1100 = vst.msk [vmem:[%s1924_s7 + $0xc] sm:$0xf] %vm1096_vm1, %v1398_v16 }
 0x11a   : > { %v986_v26 = vadd.f32 %v942_v23, %v520_v20  ;;  %v945_v27 = vadd.f32 %v1514_v24, %v1450_v21 }
 0x11b   : > { %v1020_v28 = vld [vmem:[#allocation2 + $0x20] sm:$0xff]  ;;  %v1451_v29 = vpop.f32.mrb[16].mxu0 }
 0x11c   : > { %v1399_v30 = vpack.c.bf16 %v1020_v28, %v1020_v28  ;;  %1003 = vst.msk [vmem:[#allocation2 + $0x30] sm:$0xff] %vm221_vm0, %v986_v26  ;;  %v987_v31 = vadd.f32 %v945_v27, %v521_v25  ;;  %v1515_v32 = vpop.f32.mrb[16].mxu1  ;;  %v1452_v33 = vpop.f32.mrb[17].mxu0  ;;  %v527_v27 = vld [vmem:[#allocation2 + $0x68] sm:$0xff] }
 0x11d   : > { %v1453_v35 = vadd.f32 %v1452_v33, %v1451_v29  ;;  %v1516_v36 = vpop.f32.mrb[17].mxu1  ;;  %v1454_v37 = vpop.f32.mrb[18].mxu0 }
 0x11e   : > { %v1021_v34 = vld [vmem:[#allocation2 + $0x28] sm:$0xff]  ;;  %1101 = vst.msk [vmem:[%s1924_s7 + $0x10] sm:$0xf] %vm1096_vm1, %v1399_v30  ;;  %v1517_v39 = vadd.f32 %v1516_v36, %v1515_v32  ;;  %v1518_v40 = vpop.f32.mrb[18].mxu1  ;;  %v1455_v41 = vpop.f32.mrb[19].mxu0 }
 0x11f   : > { %v1400_v38 = vpack.c.bf16 %v1021_v34, %v1021_v34  ;;  %1004 = vst.msk [vmem:[#allocation2 + $0x38] sm:$0xff] %vm221_vm0, %v987_v31  ;;  %v1456_v43 = vadd.f32 %v1455_v41, %v1454_v37  ;;  %v1519_v44 = vpop.f32.mrb[19].mxu1 }
 0x120   : > { %v950_v45 = vadd.f32 %v1517_v39, %v1453_v35  ;;  %v1520_v46 = vadd.f32 %v1519_v44, %v1518_v40  ;;  %v528_v44 = vld [vmem:[#allocation2 + $0x70] sm:$0xff] }
 0x121   : > { %1102 = vst.msk [vmem:[%s1924_s7 + $0x14] sm:$0xf] %vm1096_vm1, %v1400_v38 }
 0x122   : > { %v988_v48 = vadd.f32 %v950_v45, %v522_v42  ;;  %v953_v49 = vadd.f32 %v1520_v46, %v1456_v43 }
 0x123   : > { %v1022_v50 = vld [vmem:[#allocation2 + $0x30] sm:$0xff]  ;;  %v1457_v51 = vpop.f32.mrb[20].mxu0 }
 0x124   : > { %v1401_v52 = vpack.c.bf16 %v1022_v50, %v1022_v50  ;;  %1005 = vst.msk [vmem:[#allocation2 + $0x40] sm:$0xff] %vm221_vm0, %v988_v48  ;;  %v989_v53 = vadd.f32 %v953_v49, %v523_v47  ;;  %v1521_v54 = vpop.f32.mrb[20].mxu1  ;;  %v1458_v55 = vpop.f32.mrb[21].mxu0  ;;  %v529_v49 = vld [vmem:[#allocation2 + $0x78] sm:$0xff] }
 0x125   : > { %v1459_v57 = vadd.f32 %v1458_v55, %v1457_v51  ;;  %v1522_v58 = vpop.f32.mrb[21].mxu1  ;;  %v1460_v59 = vpop.f32.mrb[22].mxu0 }
 0x126   : > { %v1023_v56 = vld [vmem:[#allocation2 + $0x38] sm:$0xff]  ;;  %1103 = vst.msk [vmem:[%s1924_s7 + $0x18] sm:$0xf] %vm1096_vm1, %v1401_v52  ;;  %v1523_v61 = vadd.f32 %v1522_v58, %v1521_v54  ;;  %v1524_v62 = vpop.f32.mrb[22].mxu1  ;;  %v1461_v63 = vpop.f32.mrb[23].mxu0 }
 0x127   : > { %v1402_v60 = vpack.c.bf16 %v1023_v56, %v1023_v56  ;;  %1006 = vst.msk [vmem:[#allocation2 + $0x48] sm:$0xff] %vm221_vm0, %v989_v53  ;;  %v1462_v1 = vadd.f32 %v1461_v63, %v1460_v59  ;;  %v1525_v2 = vpop.f32.mrb[23].mxu1 }
 0x128   : > { %v958_v3 = vadd.f32 %v1523_v61, %v1459_v57  ;;  %v1526_v4 = vadd.f32 %v1525_v2, %v1524_v62 }
 0x129   : > { %1104 = vst.msk [vmem:[%s1924_s7 + $0x1c] sm:$0xf] %vm1096_vm1, %v1402_v60 }
 0x12a   : > { %v990_v6 = vadd.f32 %v958_v3, %v524_v0  ;;  %v961_v7 = vadd.f32 %v1526_v4, %v1462_v1 }
 0x12b   : > { %v1024_v8 = vld [vmem:[#allocation2 + $0x40] sm:$0xff]  ;;  %v1463_v9 = vpop.f32.mrb[24].mxu0 }
 0x12c   : > { %v1403_v10 = vpack.c.bf16 %v1024_v8, %v1024_v8  ;;  %1007 = vst.msk [vmem:[#allocation2 + $0x50] sm:$0xff] %vm221_vm0, %v990_v6  ;;  %v991_v11 = vadd.f32 %v961_v7, %v525_v5  ;;  %v1527_v12 = vpop.f32.mrb[24].mxu1  ;;  %v1464_v13 = vpop.f32.mrb[25].mxu0 }
 0x12d   : > { %v1465_v15 = vadd.f32 %v1464_v13, %v1463_v9  ;;  %v1528_v16 = vpop.f32.mrb[25].mxu1  ;;  %v1466_v17 = vpop.f32.mrb[26].mxu0 }
 0x12e   : > { %v1025_v14 = vld [vmem:[#allocation2 + $0x48] sm:$0xff]  ;;  %1105 = vst.msk [vmem:[%s1924_s7 + $0x20] sm:$0xf] %vm1096_vm1, %v1403_v10  ;;  %v1529_v19 = vadd.f32 %v1528_v16, %v1527_v12  ;;  %v1530_v20 = vpop.f32.mrb[26].mxu1  ;;  %v1467_v21 = vpop.f32.mrb[27].mxu0 }
 0x12f   : > { %v1404_v18 = vpack.c.bf16 %v1025_v14, %v1025_v14  ;;  %1008 = vst.msk [vmem:[#allocation2 + $0x58] sm:$0xff] %vm221_vm0, %v991_v11  ;;  %v1468_v23 = vadd.f32 %v1467_v21, %v1466_v17  ;;  %v1531_v24 = vpop.f32.mrb[27].mxu1 }
 0x130   : > { %v966_v25 = vadd.f32 %v1529_v19, %v1465_v15  ;;  %v1532_v26 = vadd.f32 %v1531_v24, %v1530_v20 }
 0x131   : > { %1106 = vst.msk [vmem:[%s1924_s7 + $0x24] sm:$0xf] %vm1096_vm1, %v1404_v18 }
 0x132   : > { %v992_v28 = vadd.f32 %v966_v25, %v526_v22  ;;  %v969_v29 = vadd.f32 %v1532_v26, %v1468_v23 }
 0x133   : > { %v1026_v30 = vld [vmem:[#allocation2 + $0x50] sm:$0xff]  ;;  %v1469_v31 = vpop.f32.mrb[28].mxu0 }
 0x134   : > { %v1405_v32 = vpack.c.bf16 %v1026_v30, %v1026_v30  ;;  %1009 = vst.msk [vmem:[#allocation2 + $0x60] sm:$0xff] %vm221_vm0, %v992_v28  ;;  %v993_v33 = vadd.f32 %v969_v29, %v527_v27  ;;  %v1533_v34 = vpop.f32.mrb[28].mxu1  ;;  %v1470_v35 = vpop.f32.mrb[29].mxu0 }
 0x135   : > { %v1471_v37 = vadd.f32 %v1470_v35, %v1469_v31  ;;  %v1534_v38 = vpop.f32.mrb[29].mxu1  ;;  %v1472_v39 = vpop.f32.mrb[30].mxu0 }
 0x136   : > { %v1027_v36 = vld [vmem:[#allocation2 + $0x58] sm:$0xff]  ;;  %1107 = vst.msk [vmem:[%s1924_s7 + $0x28] sm:$0xf] %vm1096_vm1, %v1405_v32  ;;  %v1535_v41 = vadd.f32 %v1534_v38, %v1533_v34  ;;  %v1536_v42 = vpop.f32.mrb[30].mxu1  ;;  %v1473_v43 = vpop.f32.mrb[31].mxu0 }
 0x137   : > { %v1406_v40 = vpack.c.bf16 %v1027_v36, %v1027_v36  ;;  %1010 = vst.msk [vmem:[#allocation2 + $0x68] sm:$0xff] %vm221_vm0, %v993_v33  ;;  %v1474_v45 = vadd.f32 %v1473_v43, %v1472_v39  ;;  %v1537_v46 = vpop.f32.mrb[31].mxu1 }
 0x138   : > { %v974_v47 = vadd.f32 %v1535_v41, %v1471_v37  ;;  %v1538_v48 = vadd.f32 %v1537_v46, %v1536_v42 }
 0x139   : > { %1108 = vst.msk [vmem:[%s1924_s7 + $0x2c] sm:$0xf] %vm1096_vm1, %v1406_v40 }
 0x13a   : > { %v994_v50 = vadd.f32 %v974_v47, %v528_v44  ;;  %v977_v51 = vadd.f32 %v1538_v48, %v1474_v45 }
 0x13b   : > { %v1028_v52 = vld [vmem:[#allocation2 + $0x60] sm:$0xff] }
 0x13c   : > { %v1407_v53 = vpack.c.bf16 %v1028_v52, %v1028_v52  ;;  %1011 = vst.msk [vmem:[#allocation2 + $0x70] sm:$0xff] %vm221_vm0, %v994_v50  ;;  %v995_v54 = vadd.f32 %v977_v51, %v529_v49 }
 0x13e   : > { %v1029_v55 = vld [vmem:[#allocation2 + $0x68] sm:$0xff]  ;;  %1109 = vst.msk [vmem:[%s1924_s7 + $0x30] sm:$0xf] %vm1096_vm1, %v1407_v53 }
 0x13f   : > { %v1408_v56 = vpack.c.bf16 %v1029_v55, %v1029_v55  ;;  %1012 = vst.msk [vmem:[#allocation2 + $0x78] sm:$0xff] %vm221_vm0, %v995_v54 }
 0x141   : > { %1110 = vst.msk [vmem:[%s1924_s7 + $0x34] sm:$0xf] %vm1096_vm1, %v1408_v56 }
 0x143   : > { %v1030_v57 = vld [vmem:[#allocation2 + $0x70] sm:$0xff] }
 0x144   : > { %v1409_v58 = vpack.c.bf16 %v1030_v57, %v1030_v57 }
 0x146   : > { %v1031_v59 = vld [vmem:[#allocation2 + $0x78] sm:$0xff]  ;;  %1111 = vst.msk [vmem:[%s1924_s7 + $0x38] sm:$0xf] %vm1096_vm1, %v1409_v58 }
 0x147   : > { %v1410_v60 = vpack.c.bf16 %v1031_v59, %v1031_v59 }
 0x149   : > { %1112 = vst.msk [vmem:[%s1924_s7 + $0x3c] sm:$0xf] %vm1096_vm1, %v1410_v60 }
 0x14a PF: > { %s12_s11 = sadd.s32 1, %s1619_s11   ;;  %s1984_s9 = smov %s1615_s10 }
 0x14b   : > { %p9_p5 = scmp.ge.s32.totalorder %s12_s11, 4   ;;  %s1985_s10 = smov %s1987_s12 }
 0x14d   :  { %11 = sbr.rel (!%p9_p5) target bundleno = 2 (0x2), region = 69 }

</bundles_post_ra>
